<compile_context>
chip_gen: v7x
topology: tpu7x:2x2x1
jax: 0.10.0
libtpu: 0.0.40
codegen_flags: <defaults>
</compile_context>

<pallas_src>
import functools

import jax
import jax.numpy as jnp
from jax import lax
from jax.experimental import pallas as pl
from jax.experimental.pallas import tpu as pltpu


# ---------------------------------------------------------------------------
# In-kernel helpers (all f32 elementwise)
# ---------------------------------------------------------------------------
def _l2norm(x):
    # torch F.normalize(p=2, dim=-1): x / max(||x||, 1e-12)
    ss = jnp.sum(x * x, axis=-1, keepdims=True)
    return x * lax.rsqrt(jnp.maximum(ss, 1e-24))


def _leaky(x):
    return jnp.where(x > 0, x, 0.2 * x)


# ---------------------------------------------------------------------------
# Kernel: one batch element per grid step
# ---------------------------------------------------------------------------
def relation_kernel(q_ref, s_ref, wq4_ref, wfts_ref, wr1_ref, wr2_ref, vecs_ref,
                    out_ref, *, n_query, n_way, hidden_dim):
    Nq, Nw, H = n_query, n_way, hidden_dim
    P = Nq * Nw
    inv_sqrt_h = float(H) ** -0.5
    bf16 = jnp.bfloat16

    # l2-normalize in f32, downcast only the MXU operands.
    q = _l2norm(q_ref[...])                                   # [Nq, F] f32
    s = _l2norm(s_ref[...])                                   # [Nw, F] f32
    qb = q.astype(bf16)
    sb = s.astype(bf16)

    # Fused q-side matmul: Wq | Wk | Wv | Wft_q  (single RHS push, N = 4H).
    proj = jnp.dot(qb, wq4_ref[...], preferred_element_type=jnp.float32)  # [Nq, 4H]
    qx = proj[:, 0:H] + vecs_ref[0:1, :]
    kx = proj[:, H:2 * H] + vecs_ref[1:2, :]
    vx = proj[:, 2 * H:3 * H] + vecs_ref[2:3, :]
    qt = proj[:, 3 * H:4 * H]                 # BN-folded q half of feature_transform

    # Per-batch self-attention over the query tokens ([Nq, Nq] scores).
    sc = lax.dot_general(qx.astype(bf16), kx.astype(bf16),
                         (((1,), (1,)), ((), ())),
                         preferred_element_type=jnp.float32) * inv_sqrt_h
    sc = sc - jnp.max(sc, axis=-1, keepdims=True)
    e = jnp.exp(sc)
    p = e / jnp.sum(e, axis=-1, keepdims=True)                # exact softmax, f32
    attended_q = jnp.dot(p.astype(bf16), vx.astype(bf16),
                         preferred_element_type=jnp.float32)  # [Nq, H]
    # NOTE: attended_support / cross_attention_scores are never consumed by
    # forward() in the torch module; intentionally not computed.

    # Factored feature_transform (BN folded): cat([q_i, s_j]) @ Wft
    #   = q_i @ Wft[:F] + s_j @ Wft[F:], added with implicit broadcasts.
    st = jnp.dot(sb, wfts_ref[...], preferred_element_type=jnp.float32)   # [Nw, H]
    t = _leaky(qt[:, None, :] + st[None, :, :] + vecs_ref[3:4, :])        # [Nq, Nw, H]

    # Relation layer 1: pair half + attended-query half (no [P,H] broadcast copies).
    aq1 = jnp.dot(attended_q.astype(bf16), wr1_ref[H:2 * H, :],
                  preferred_element_type=jnp.float32)                     # [Nq, H]
    r0 = jnp.dot(t.astype(bf16).reshape(P, H), wr1_ref[0:H, :],
                 preferred_element_type=jnp.float32).reshape(Nq, Nw, H)
    r = _leaky(r0 + aq1[:, None, :] + vecs_ref[4:5, :])                   # [Nq, Nw, H]

    # Relation layer 2 (BN folded, weight zero-padded to H lanes -> lane-dense).
    r2 = jnp.dot(r.astype(bf16).reshape(P, H), wr2_ref[...],
                 preferred_element_type=jnp.float32).reshape(Nq, Nw, H)
    r2 = _leaky(r2 + vecs_ref[5:6, :])                                    # [Nq, Nw, H]

    # Final Linear(H2 -> 1) as a lane reduction of r2 * w3 (w3 zero-padded),
    # then sigmoid.  Avoids an XLU transpose of r2.
    scores = jnp.sum(r2 * vecs_ref[6:7, :], axis=-1)                      # [Nq, Nw]
    out_ref[...] = jax.nn.sigmoid(scores + vecs_ref[7:8, 0:1]).reshape(1, Nq, Nw)


# ---------------------------------------------------------------------------
# Wrapper
# ---------------------------------------------------------------------------
def relation_forward(query, support, params):
    B, Nq, F = query.shape
    _, Nw, _ = support.shape
    H = params["wr1"].shape[1]
    P = Nq * Nw
    assert Nq % 8 == 0 and Nw % 8 == 0, "n_query / n_way must be multiples of 8"

    q2 = query.reshape(B * Nq, F)
    s2 = support.reshape(B * Nw, F)

    kernel = functools.partial(relation_kernel, n_query=Nq, n_way=Nw, hidden_dim=H)

    def resident(shape):
        # Weight stays in VMEM across grid steps (block index never changes).
        return pl.BlockSpec(shape, lambda b, _n=len(shape): (0,) * _n)

    flops = 2 * B * (Nq * F * 4 * H        # fused q-side matmul
                     + Nw * F * H          # s-side feature transform
                     + 2 * Nq * Nq * H     # attention score + attended value
                     + Nq * H * H          # attended half of relation layer 1
                     + P * H * H           # pair half of relation layer 1
                     + P * H * H           # relation layer 2 (padded to H lanes)
                     + P * H)              # final lane reduction
    transcendentals = B * (Nq * Nq + P)    # softmax exp + sigmoid
    bytes_accessed = ((q2.size + s2.size + params["vecs"].size) * 4
                      + (params["wq4"].size + params["wfts"].size
                         + params["wr1"].size + params["wr2"].size) * 2
                      + B * P * 4)

    out = pl.pallas_call(
        kernel,
        out_shape=jax.ShapeDtypeStruct((B, Nq, Nw), jnp.float32),
        grid=(B,),
        in_specs=[
            pl.BlockSpec((Nq, F), lambda b: (b, 0)),   # query tokens of batch b
            pl.BlockSpec((Nw, F), lambda b: (b, 0)),   # support tokens of batch b
            resident((F, 4 * H)),                      # fused Wq|Wk|Wv|Wft_q (bf16)
            resident((F, H)),                          # Wft_s (bf16, BN folded)
            resident((2 * H, H)),                      # relation layer 1 (bf16, BN folded)
            resident((H, H)),                          # relation layer 2 padded (bf16)
            resident((8, H)),                          # packed f32 bias / final vectors
        ],
        out_specs=pl.BlockSpec((1, Nq, Nw), lambda b: (b, 0, 0)),
        compiler_params=pltpu.CompilerParams(dimension_semantics=("parallel",)),
        cost_estimate=pl.CostEstimate(flops=flops,
                                      transcendentals=transcendentals,
                                      bytes_accessed=bytes_accessed),
    )(q2, s2, params["wq4"], params["wfts"], params["wr1"], params["wr2"],
      params["vecs"])

    return out


# ---------------------------------------------------------------------------
# Parameter construction (raw torch-like params) + packing for the kernel
# ---------------------------------------------------------------------------
def init_raw_params(key, feature_dim, hidden_dim):
    H2 = hidden_dim // 2
    ks = jax.random.split(key, 10)

    def lin(k, fan_in, fan_out):
        bound = 1.0 / jnp.sqrt(jnp.float32(fan_in))
        kw, kb = jax.random.split(k)
        w = jax.random.uniform(kw, (fan_in, fan_out), jnp.float32, -bound, bound)
        b = jax.random.uniform(kb, (fan_out,), jnp.float32, -bound, bound)
        return w, b

    def bn_stats(k, n):
        kg, kb, km, kv = jax.random.split(k, 4)
        gamma = jax.random.uniform(kg, (n,), jnp.float32, 0.8, 1.2)
        beta = 0.1 * jax.random.normal(kb, (n,), jnp.float32)
        mean = 0.1 * jax.random.normal(km, (n,), jnp.float32)
        var = jax.random.uniform(kv, (n,), jnp.float32, 0.5, 1.5)
        return gamma, beta, mean, var

    wq, bq = lin(ks[0], feature_dim, hidden_dim)
    wk, bk = lin(ks[1], feature_dim, hidden_dim)
    wv, bv = lin(ks[2], feature_dim, hidden_dim)
    wft, bft = lin(ks[3], 2 * feature_dim, hidden_dim)
    wr1, br1 = lin(ks[4], 2 * hidden_dim, hidden_dim)
    wr2, br2 = lin(ks[5], hidden_dim, H2)
    wr3, br3 = lin(ks[6], H2, 1)

    return dict(
        wq=wq, bq=bq, wk=wk, bk=bk, wv=wv, bv=bv,
        wft=wft, bft=bft, bn_ft=bn_stats(ks[7], hidden_dim),
        wr1=wr1, br1=br1, bn_r1=bn_stats(ks[8], hidden_dim),
        wr2=wr2, br2=br2, bn_r2=bn_stats(ks[9], H2),
        wr3=wr3, br3=br3,
    )


def pack_params(raw, eps=1e-5):
    """Fuse QKV + q-side feature transform, fold eval-mode BN, cast MXU weights
    to bf16, zero-pad the narrow tail to H lanes, pack small f32 vectors."""
    F = raw["wq"].shape[0]
    H = raw["wq"].shape[1]
    H2 = raw["wr2"].shape[1]
    assert F % 128 == 0, "feature_dim must be a multiple of 128 lanes"
    assert H % 128 == 0, "hidden_dim must be a multiple of 128 lanes"
    assert H2 <= H, "hidden_dim // 2 must fit in the H-wide packed vectors"

    def fold_bn(w, b, bn):
        g, be, m, v = bn
        scale = g / jnp.sqrt(v + eps)
        return w * scale[None, :], (b - m) * scale + be

    wft_f, bft_f = fold_bn(raw["wft"], raw["bft"], raw["bn_ft"])
    wr1_f, br1_f = fold_bn(raw["wr1"], raw["br1"], raw["bn_r1"])
    wr2_f, br2_f = fold_bn(raw["wr2"], raw["br2"], raw["bn_r2"])

    def pad_row(v, n):
        return jnp.pad(v, (0, n - v.shape[0]))

    vecs = jnp.stack([
        raw["bq"], raw["bk"], raw["bv"],       # rows 0-2: QKV biases
        bft_f,                                 # row 3: folded feature_transform bias
        br1_f,                                 # row 4: folded relation-1 bias
        pad_row(br2_f, H),                     # row 5: folded relation-2 bias (zero-padded)
        pad_row(raw["wr3"][:, 0], H),          # row 6: final weight row (zero-padded)
        pad_row(raw["br3"], H),                # row 7: final bias at lane 0
    ], axis=0).astype(jnp.float32)

    bf16 = jnp.bfloat16
    wq4 = jnp.concatenate([raw["wq"], raw["wk"], raw["wv"], wft_f[:F]], axis=1)
    wr2_pad = jnp.pad(wr2_f, ((0, 0), (0, H - H2)))

    return dict(
        wq4=wq4.astype(bf16),            # [F, 4H]
        wfts=wft_f[F:].astype(bf16),     # [F, H]
        wr1=wr1_f.astype(bf16),          # [2H, H]
        wr2=wr2_pad.astype(bf16),        # [H, H] (cols H2.. are zero)
        vecs=vecs,                       # [8, H] f32
    )


# ---------------------------------------------------------------------------
# Pure-JAX reference of the torch forward (eval mode) for validation
# ---------------------------------------------------------------------------
def reference_forward(query, support, raw, eps=1e-5):
    def l2n(x):
        n = jnp.sqrt(jnp.sum(x * x, axis=-1, keepdims=True))
        return x / jnp.maximum(n, 1e-12)

    def bn(x, p):
        g, be, m, v = p
        return (x - m) / jnp.sqrt(v + eps) * g + be

    def leaky(x):
        return jnp.where(x > 0, x, 0.2 * x)

    B, Nq, F = query.shape
    Nw = support.shape[1]
    H = raw["wq"].shape[1]

    q = l2n(query)
    s = l2n(support)
    qq = q @ raw["wq"] + raw["bq"]
    kq = q @ raw["wk"] + raw["bk"]
    vq = q @ raw["wv"] + raw["bv"]
    att = jax.nn.softmax(jnp.einsum("bqh,bkh->bqk", qq, kq) / jnp.sqrt(jnp.float32(H)), -1)
    attended_q = jnp.einsum("bqk,bkh->bqh", att, vq)

    q_exp = jnp.broadcast_to(q[:, :, None, :], (B, Nq, Nw, F))
    s_exp = jnp.broadcast_to(s[:, None, :, :], (B, Nq, Nw, F))
    paired = jnp.concatenate([q_exp, s_exp], axis=-1).reshape(-1, 2 * F)
    t = leaky(bn(paired @ raw["wft"] + raw["bft"], raw["bn_ft"]))

    aq = jnp.broadcast_to(attended_q[:, :, None, :], (B, Nq, Nw, H)).reshape(-1, H)
    comb = jnp.concatenate([t, aq], axis=-1)
    r = leaky(bn(comb @ raw["wr1"] + raw["br1"], raw["bn_r1"]))
    r = leaky(bn(r @ raw["wr2"] + raw["br2"], raw["bn_r2"]))
    logits = r @ raw["wr3"] + raw["br3"]
    return jax.nn.sigmoid(logits).reshape(B, Nq, Nw)


if __name__ == "__main__":
    B, Nq, Nw, FEAT, HID = 2, 8, 8, 128, 128
    key = jax.random.PRNGKey(0)
    kq, ks, kp = jax.random.split(key, 3)
    query = jax.random.normal(kq, (B, Nq, FEAT), jnp.float32)
    support = jax.random.normal(ks, (B, Nw, FEAT), jnp.float32)

    raw = init_raw_params(kp, FEAT, HID)
    params = pack_params(raw)

    out = relation_forward(query, support, params)
    jax.block_until_ready(out)
    assert out.shape == (B, Nq, Nw)
    assert bool(jnp.all((out >= 0.0) & (out <= 1.0)))

    ref = reference_forward(query, support, raw)
    max_err = float(jnp.max(jnp.abs(out - ref)))
    assert max_err < 2e-2, f"kernel/reference mismatch: max abs err = {max_err}"
    print("KERNEL_OK")
</pallas_src>

<mosaic_0001>
module attributes {stable_mosaic.version = 11 : i64} {
  func.func @relation_kernel(%arg0: i32, %arg1: memref<8x128xf32, #tpu.memory_space<vmem>>, %arg2: memref<8x128xf32, #tpu.memory_space<vmem>>, %arg3: memref<128x512xbf16, #tpu.memory_space<vmem>>, %arg4: memref<128x128xbf16, #tpu.memory_space<vmem>>, %arg5: memref<256x128xbf16, #tpu.memory_space<vmem>>, %arg6: memref<128x128xbf16, #tpu.memory_space<vmem>>, %arg7: memref<8x128xf32, #tpu.memory_space<vmem>>, %arg8: memref<1x8x8xf32, #tpu.memory_space<vmem>>) attributes {dimension_semantics = [#tpu.dimension_semantics<parallel>], iteration_bounds = array<i64: 2>, scalar_prefetch = 0 : i64, scratch_operands = 0 : i64, tpu.core_type = #tpu.core_type<tc>, window_params = [{transform_indices = @transform_0, window_bounds = array<i64: 8, 128>}, {transform_indices = @transform_1, window_bounds = array<i64: 8, 128>}, {pipeline_mode = #tpu.pipeline_mode<synchronous>, transform_indices = @transform_2, window_bounds = array<i64: 128, 512>}, {pipeline_mode = #tpu.pipeline_mode<synchronous>, transform_indices = @transform_3, window_bounds = array<i64: 128, 128>}, {pipeline_mode = #tpu.pipeline_mode<synchronous>, transform_indices = @transform_4, window_bounds = array<i64: 256, 128>}, {pipeline_mode = #tpu.pipeline_mode<synchronous>, transform_indices = @transform_5, window_bounds = array<i64: 128, 128>}, {pipeline_mode = #tpu.pipeline_mode<synchronous>, transform_indices = @transform_6, window_bounds = array<i64: 8, 128>}, {transform_indices = @transform_7, window_bounds = array<i64: 1, 8, 8>}]} {
    %c0 = arith.constant 0 : index
    %c0_0 = arith.constant 0 : index
    %0 = vector.load %arg1[%c0, %c0_0] : memref<8x128xf32, #tpu.memory_space<vmem>>, vector<8x128xf32>
    %1 = arith.mulf %0, %0 : vector<8x128xf32>
    %cst = arith.constant dense<0.000000e+00> : vector<8xf32>
    %2 = vector.multi_reduction <add>, %1, %cst [1] : vector<8x128xf32> to vector<8xf32>
    %3 = vector.shape_cast %2 : vector<8xf32> to vector<8x1xf32>
    %cst_1 = arith.constant 1.000000e-24 : f32
    %4 = vector.broadcast %cst_1 : f32 to vector<8x1xf32>
    %5 = arith.maximumf %3, %4 : vector<8x1xf32>
    %6 = math.rsqrt %5 : vector<8x1xf32>
    %7 = vector.broadcast %6 : vector<8x1xf32> to vector<8x128xf32>
    %8 = arith.mulf %0, %7 : vector<8x128xf32>
    %c0_2 = arith.constant 0 : index
    %c0_3 = arith.constant 0 : index
    %9 = vector.load %arg2[%c0_2, %c0_3] : memref<8x128xf32, #tpu.memory_space<vmem>>, vector<8x128xf32>
    %10 = arith.mulf %9, %9 : vector<8x128xf32>
    %cst_4 = arith.constant dense<0.000000e+00> : vector<8xf32>
    %11 = vector.multi_reduction <add>, %10, %cst_4 [1] : vector<8x128xf32> to vector<8xf32>
    %12 = vector.shape_cast %11 : vector<8xf32> to vector<8x1xf32>
    %cst_5 = arith.constant 1.000000e-24 : f32
    %13 = vector.broadcast %cst_5 : f32 to vector<8x1xf32>
    %14 = arith.maximumf %12, %13 : vector<8x1xf32>
    %15 = math.rsqrt %14 : vector<8x1xf32>
    %16 = vector.broadcast %15 : vector<8x1xf32> to vector<8x128xf32>
    %17 = arith.mulf %9, %16 : vector<8x128xf32>
    %18 = arith.truncf %8 : vector<8x128xf32> to vector<8x128xbf16>
    %19 = arith.truncf %17 : vector<8x128xf32> to vector<8x128xbf16>
    %c0_6 = arith.constant 0 : index
    %c0_7 = arith.constant 0 : index
    %20 = vector.load %arg3[%c0_6, %c0_7] : memref<128x512xbf16, #tpu.memory_space<vmem>>, vector<128x512xbf16>
    %cst_8 = arith.constant dense<0.000000e+00> : vector<8x512xf32>
    %21 = tpu.matmul %18, %20, %cst_8 {dimension_numbers = #tpu.dot_dimension_numbers<[1], [0], [0], [1], [0, 0, 1, 1], [], []>} : vector<8x128xbf16>, vector<128x512xbf16>, vector<8x512xf32> -> vector<8x512xf32>
    %22 = vector.extract_strided_slice %21 {offsets = [0, 0], sizes = [8, 128], strides = [1, 1]} : vector<8x512xf32> to vector<8x128xf32>
    %c0_9 = arith.constant 0 : index
    %c0_10 = arith.constant 0 : index
    %23 = vector.load %arg7[%c0_9, %c0_10] : memref<8x128xf32, #tpu.memory_space<vmem>>, vector<1x128xf32>
    %24 = vector.broadcast %23 : vector<1x128xf32> to vector<8x128xf32>
    %25 = arith.addf %22, %24 : vector<8x128xf32>
    %26 = vector.extract_strided_slice %21 {offsets = [0, 128], sizes = [8, 128], strides = [1, 1]} : vector<8x512xf32> to vector<8x128xf32>
    %c1 = arith.constant 1 : index
    %c0_11 = arith.constant 0 : index
    %27 = vector.load %arg7[%c1, %c0_11] : memref<8x128xf32, #tpu.memory_space<vmem>>, vector<1x128xf32>
    %28 = vector.broadcast %27 : vector<1x128xf32> to vector<8x128xf32>
    %29 = arith.addf %26, %28 : vector<8x128xf32>
    %30 = vector.extract_strided_slice %21 {offsets = [0, 256], sizes = [8, 128], strides = [1, 1]} : vector<8x512xf32> to vector<8x128xf32>
    %c2 = arith.constant 2 : index
    %c0_12 = arith.constant 0 : index
    %31 = vector.load %arg7[%c2, %c0_12] : memref<8x128xf32, #tpu.memory_space<vmem>>, vector<1x128xf32>
    %32 = vector.broadcast %31 : vector<1x128xf32> to vector<8x128xf32>
    %33 = arith.addf %30, %32 : vector<8x128xf32>
    %34 = vector.extract_strided_slice %21 {offsets = [0, 384], sizes = [8, 128], strides = [1, 1]} : vector<8x512xf32> to vector<8x128xf32>
    %35 = arith.truncf %25 : vector<8x128xf32> to vector<8x128xbf16>
    %36 = arith.truncf %29 : vector<8x128xf32> to vector<8x128xbf16>
    %cst_13 = arith.constant dense<0.000000e+00> : vector<8x8xf32>
    %37 = tpu.matmul %35, %36, %cst_13 {dimension_numbers = #tpu.dot_dimension_numbers<[1], [1], [0], [0], [0, 0, 1, 0], [], []>} : vector<8x128xbf16>, vector<8x128xbf16>, vector<8x8xf32> -> vector<8x8xf32>
    %cst_14 = arith.constant 0.0883883461 : f32
    %38 = vector.broadcast %cst_14 : f32 to vector<8x8xf32>
    %39 = arith.mulf %37, %38 : vector<8x8xf32>
    %cst_15 = arith.constant dense<0xFF800000> : vector<8xf32>
    %40 = vector.multi_reduction <maximumf>, %39, %cst_15 [1] : vector<8x8xf32> to vector<8xf32>
    %41 = vector.shape_cast %40 : vector<8xf32> to vector<8x1xf32>
    %42 = vector.broadcast %41 : vector<8x1xf32> to vector<8x8xf32>
    %43 = arith.subf %39, %42 : vector<8x8xf32>
    %44 = math.exp %43 : vector<8x8xf32>
    %cst_16 = arith.constant dense<0.000000e+00> : vector<8xf32>
    %45 = vector.multi_reduction <add>, %44, %cst_16 [1] : vector<8x8xf32> to vector<8xf32>
    %46 = vector.shape_cast %45 : vector<8xf32> to vector<8x1xf32>
    %47 = vector.broadcast %46 : vector<8x1xf32> to vector<8x8xf32>
    %48 = arith.divf %44, %47 : vector<8x8xf32>
    %49 = arith.truncf %48 : vector<8x8xf32> to vector<8x8xbf16>
    %50 = arith.truncf %33 : vector<8x128xf32> to vector<8x128xbf16>
    %cst_17 = arith.constant dense<0.000000e+00> : vector<8x128xf32>
    %51 = tpu.matmul %49, %50, %cst_17 {dimension_numbers = #tpu.dot_dimension_numbers<[1], [0], [0], [1], [0, 0, 1, 1], [], []>} : vector<8x8xbf16>, vector<8x128xbf16>, vector<8x128xf32> -> vector<8x128xf32>
    %c0_18 = arith.constant 0 : index
    %c0_19 = arith.constant 0 : index
    %52 = vector.load %arg4[%c0_18, %c0_19] : memref<128x128xbf16, #tpu.memory_space<vmem>>, vector<128x128xbf16>
    %cst_20 = arith.constant dense<0.000000e+00> : vector<8x128xf32>
    %53 = tpu.matmul %19, %52, %cst_20 {dimension_numbers = #tpu.dot_dimension_numbers<[1], [0], [0], [1], [0, 0, 1, 1], [], []>} : vector<8x128xbf16>, vector<128x128xbf16>, vector<8x128xf32> -> vector<8x128xf32>
    %54 = vector.shape_cast %34 : vector<8x128xf32> to vector<8x1x128xf32>
    %55 = vector.shape_cast %53 : vector<8x128xf32> to vector<1x8x128xf32>
    %56 = vector.broadcast %54 : vector<8x1x128xf32> to vector<8x8x128xf32>
    %57 = vector.broadcast %55 : vector<1x8x128xf32> to vector<8x8x128xf32>
    %58 = arith.addf %56, %57 : vector<8x8x128xf32>
    %c3 = arith.constant 3 : index
    %c0_21 = arith.constant 0 : index
    %59 = vector.load %arg7[%c3, %c0_21] : memref<8x128xf32, #tpu.memory_space<vmem>>, vector<1x128xf32>
    %60 = vector.shape_cast %59 : vector<1x128xf32> to vector<1x1x128xf32>
    %61 = vector.broadcast %60 : vector<1x1x128xf32> to vector<8x8x128xf32>
    %62 = arith.addf %58, %61 : vector<8x8x128xf32>
    %cst_22 = arith.constant 0.000000e+00 : f32
    %63 = vector.broadcast %cst_22 : f32 to vector<8x8x128xf32>
    %64 = arith.cmpf ogt, %62, %63 : vector<8x8x128xf32>
    %cst_23 = arith.constant 2.000000e-01 : f32
    %65 = vector.broadcast %cst_23 : f32 to vector<8x8x128xf32>
    %66 = arith.mulf %65, %62 : vector<8x8x128xf32>
    %67 = arith.select %64, %62, %66 : vector<8x8x128xi1>, vector<8x8x128xf32>
    %68 = arith.truncf %51 : vector<8x128xf32> to vector<8x128xbf16>
    %c128 = arith.constant 128 : index
    %c0_24 = arith.constant 0 : index
    %69 = vector.load %arg5[%c128, %c0_24] : memref<256x128xbf16, #tpu.memory_space<vmem>>, vector<128x128xbf16>
    %cst_25 = arith.constant dense<0.000000e+00> : vector<8x128xf32>
    %70 = tpu.matmul %68, %69, %cst_25 {dimension_numbers = #tpu.dot_dimension_numbers<[1], [0], [0], [1], [0, 0, 1, 1], [], []>} : vector<8x128xbf16>, vector<128x128xbf16>, vector<8x128xf32> -> vector<8x128xf32>
    %71 = arith.truncf %67 : vector<8x8x128xf32> to vector<8x8x128xbf16>
    %72 = vector.shape_cast %71 : vector<8x8x128xbf16> to vector<64x128xbf16>
    %c0_26 = arith.constant 0 : index
    %c0_27 = arith.constant 0 : index
    %73 = vector.load %arg5[%c0_26, %c0_27] : memref<256x128xbf16, #tpu.memory_space<vmem>>, vector<128x128xbf16>
    %cst_28 = arith.constant dense<0.000000e+00> : vector<64x128xf32>
    %74 = tpu.matmul %72, %73, %cst_28 {dimension_numbers = #tpu.dot_dimension_numbers<[1], [0], [0], [1], [0, 0, 1, 1], [], []>} : vector<64x128xbf16>, vector<128x128xbf16>, vector<64x128xf32> -> vector<64x128xf32>
    %75 = vector.shape_cast %74 : vector<64x128xf32> to vector<8x8x128xf32>
    %76 = vector.shape_cast %70 : vector<8x128xf32> to vector<8x1x128xf32>
    %77 = vector.broadcast %76 : vector<8x1x128xf32> to vector<8x8x128xf32>
    %78 = arith.addf %75, %77 : vector<8x8x128xf32>
    %c4 = arith.constant 4 : index
    %c0_29 = arith.constant 0 : index
    %79 = vector.load %arg7[%c4, %c0_29] : memref<8x128xf32, #tpu.memory_space<vmem>>, vector<1x128xf32>
    %80 = vector.shape_cast %79 : vector<1x128xf32> to vector<1x1x128xf32>
    %81 = vector.broadcast %80 : vector<1x1x128xf32> to vector<8x8x128xf32>
    %82 = arith.addf %78, %81 : vector<8x8x128xf32>
    %cst_30 = arith.constant 0.000000e+00 : f32
    %83 = vector.broadcast %cst_30 : f32 to vector<8x8x128xf32>
    %84 = arith.cmpf ogt, %82, %83 : vector<8x8x128xf32>
    %cst_31 = arith.constant 2.000000e-01 : f32
    %85 = vector.broadcast %cst_31 : f32 to vector<8x8x128xf32>
    %86 = arith.mulf %85, %82 : vector<8x8x128xf32>
    %87 = arith.select %84, %82, %86 : vector<8x8x128xi1>, vector<8x8x128xf32>
    %88 = arith.truncf %87 : vector<8x8x128xf32> to vector<8x8x128xbf16>
    %89 = vector.shape_cast %88 : vector<8x8x128xbf16> to vector<64x128xbf16>
    %c0_32 = arith.constant 0 : index
    %c0_33 = arith.constant 0 : index
    %90 = vector.load %arg6[%c0_32, %c0_33] : memref<128x128xbf16, #tpu.memory_space<vmem>>, vector<128x128xbf16>
    %cst_34 = arith.constant dense<0.000000e+00> : vector<64x128xf32>
    %91 = tpu.matmul %89, %90, %cst_34 {dimension_numbers = #tpu.dot_dimension_numbers<[1], [0], [0], [1], [0, 0, 1, 1], [], []>} : vector<64x128xbf16>, vector<128x128xbf16>, vector<64x128xf32> -> vector<64x128xf32>
    %92 = vector.shape_cast %91 : vector<64x128xf32> to vector<8x8x128xf32>
    %c5 = arith.constant 5 : index
    %c0_35 = arith.constant 0 : index
    %93 = vector.load %arg7[%c5, %c0_35] : memref<8x128xf32, #tpu.memory_space<vmem>>, vector<1x128xf32>
    %94 = vector.shape_cast %93 : vector<1x128xf32> to vector<1x1x128xf32>
    %95 = vector.broadcast %94 : vector<1x1x128xf32> to vector<8x8x128xf32>
    %96 = arith.addf %92, %95 : vector<8x8x128xf32>
    %cst_36 = arith.constant 0.000000e+00 : f32
    %97 = vector.broadcast %cst_36 : f32 to vector<8x8x128xf32>
    %98 = arith.cmpf ogt, %96, %97 : vector<8x8x128xf32>
    %cst_37 = arith.constant 2.000000e-01 : f32
    %99 = vector.broadcast %cst_37 : f32 to vector<8x8x128xf32>
    %100 = arith.mulf %99, %96 : vector<8x8x128xf32>
    %101 = arith.select %98, %96, %100 : vector<8x8x128xi1>, vector<8x8x128xf32>
    %c6 = arith.constant 6 : index
    %c0_38 = arith.constant 0 : index
    %102 = vector.load %arg7[%c6, %c0_38] : memref<8x128xf32, #tpu.memory_space<vmem>>, vector<1x128xf32>
    %103 = vector.shape_cast %102 : vector<1x128xf32> to vector<1x1x128xf32>
    %104 = vector.broadcast %103 : vector<1x1x128xf32> to vector<8x8x128xf32>
    %105 = arith.mulf %101, %104 : vector<8x8x128xf32>
    %cst_39 = arith.constant dense<0.000000e+00> : vector<8x8xf32>
    %106 = vector.multi_reduction <add>, %105, %cst_39 [2] : vector<8x8x128xf32> to vector<8x8xf32>
    %c7 = arith.constant 7 : index
    %c0_40 = arith.constant 0 : index
    %107 = vector.load %arg7[%c7, %c0_40] : memref<8x128xf32, #tpu.memory_space<vmem>>, vector<1x1xf32>
    %108 = vector.broadcast %107 : vector<1x1xf32> to vector<8x8xf32>
    %109 = arith.addf %106, %108 : vector<8x8xf32>
    %110 = arith.negf %109 : vector<8x8xf32>
    %111 = math.exp %110 : vector<8x8xf32>
    %cst_41 = arith.constant 1.000000e+00 : f32
    %112 = vector.broadcast %cst_41 : f32 to vector<8x8xf32>
    %113 = arith.addf %112, %111 : vector<8x8xf32>
    %114 = arith.divf %112, %113 : vector<8x8xf32>
    %115 = vector.shape_cast %114 : vector<8x8xf32> to vector<1x8x8xf32>
    %c0_42 = arith.constant 0 : index
    %c0_43 = arith.constant 0 : index
    %c0_44 = arith.constant 0 : index
    %116 = vector.load %arg8[%c0_42, %c0_43, %c0_44] : memref<1x8x8xf32, #tpu.memory_space<vmem>>, vector<1x8x8xf32>
    tpu.vector_store %arg8[%c0_42, %c0_43, %c0_44], %115 {strides = array<i32>} : memref<1x8x8xf32, #tpu.memory_space<vmem>>, vector<1x8x8xf32>,
    return
  }
  func.func @transform_0(%arg0: i32) -> (i32, i32) {
    %c0_i32 = arith.constant 0 : i32
    %c0_i32_0 = arith.constant 0 : i32
    return %arg0, %c0_i32 : i32, i32
  }
  func.func @transform_1(%arg0: i32) -> (i32, i32) {
    %c0_i32 = arith.constant 0 : i32
    %c0_i32_0 = arith.constant 0 : i32
    return %arg0, %c0_i32 : i32, i32
  }
  func.func @transform_2(%arg0: i32) -> (i32, i32) {
    %c0_i32 = arith.constant 0 : i32
    %c0_i32_0 = arith.constant 0 : i32
    %c0_i32_1 = arith.constant 0 : i32
    return %c0_i32, %c0_i32_0 : i32, i32
  }
  func.func @transform_3(%arg0: i32) -> (i32, i32) {
    %c0_i32 = arith.constant 0 : i32
    %c0_i32_0 = arith.constant 0 : i32
    %c0_i32_1 = arith.constant 0 : i32
    return %c0_i32, %c0_i32_0 : i32, i32
  }
  func.func @transform_4(%arg0: i32) -> (i32, i32) {
    %c0_i32 = arith.constant 0 : i32
    %c0_i32_0 = arith.constant 0 : i32
    %c0_i32_1 = arith.constant 0 : i32
    return %c0_i32, %c0_i32_0 : i32, i32
  }
  func.func @transform_5(%arg0: i32) -> (i32, i32) {
    %c0_i32 = arith.constant 0 : i32
    %c0_i32_0 = arith.constant 0 : i32
    %c0_i32_1 = arith.constant 0 : i32
    return %c0_i32, %c0_i32_0 : i32, i32
  }
  func.func @transform_6(%arg0: i32) -> (i32, i32) {
    %c0_i32 = arith.constant 0 : i32
    %c0_i32_0 = arith.constant 0 : i32
    %c0_i32_1 = arith.constant 0 : i32
    return %c0_i32, %c0_i32_0 : i32, i32
  }
  func.func @transform_7(%arg0: i32) -> (i32, i32, i32) {
    %c0_i32 = arith.constant 0 : i32
    %c0_i32_0 = arith.constant 0 : i32
    %c0_i32_1 = arith.constant 0 : i32
    return %arg0, %c0_i32, %c0_i32_0 : i32, i32, i32
  }
}

</mosaic_0001>

<bundles_post_ra>
// kernel: tpu_custom_call.1
= control target key start
LH: loop header
LB: loop body
LE: loop exit
PB: predicated region body
PF: predicated region fallthrough
CT: control target
= control target key end

     0   :  { %s3199_s0 = inlined_call_operand.hbm [shape: f32[16,128], index: 0, kind: input, shape index: {}]   ;;  %s3200_s1 = inlined_call_operand.hbm [shape: f32[16,128], index: 1, kind: input, shape index: {}]   ;;  %s3201_s2 = inlined_call_operand.hbm [shape: bf16[128,512], index: 2, kind: input, shape index: {}]   ;;  %s3202_s3 = inlined_call_operand.hbm [shape: bf16[128,128], index: 3, kind: input, shape index: {}]   ;;  %s3203_s4 = inlined_call_operand.hbm [shape: bf16[256,128], index: 4, kind: input, shape index: {}]   ;;  %s3204_s5 = inlined_call_operand.hbm [shape: bf16[128,128], index: 5, kind: input, shape index: {}]   ;;  %s3205_s6 = inlined_call_operand.vmem [shape: f32[8,128], index: 6, kind: input, shape index: {}]   ;;  %s3206_s7 = inlined_call_operand.hbm [shape: f32[2,8,8], index: 7, kind: output, shape index: {}]  }
   0x1   :  { %3211 = sst [smem:[#allocation20_spill]] %s3201_s2 }
   0x2   :  { %3212 = sst [smem:[#allocation21_spill]] %s3202_s3 }
   0x3   :  { %3213 = sst [smem:[#allocation22_spill]] %s3203_s4 }
   0x4   :  { %3214 = sst [smem:[#allocation23_spill]] %s3204_s5 }
   0x5   :  { %12 = vsyncpa [#allocation3], 0 }
   0x6   :  { %14 = vsyncpa [#allocation3 + $0x1], 0 }
   0x7   :  { %15 = vsyncpa [#allocation6], 0 }
   0x8   :  { %17 = vsyncpa [#allocation6 + $0x1], 0 }
   0x9   :  { %18 = vsyncpa [#allocation9], 0 }
   0xa   :  { %19 = vsyncpa [#allocation12], 0 }
   0xb   :  { %20 = vsyncpa [#allocation4], 0 }
   0xc   :  { %22 = vsyncpa [#allocation4 + $0x1], 0  ;;  %s2731_s24 = smov 0   ;;  %s2733_s25 = smov 0  }
   0xd   :  { %s2735_s26 = smov 0   ;;  %s2737_s27 = smov 0  }
   0xe LB: > { %s2676_s28 = smov [#allocation7]   ;;  %s2752_s30 = sadd.s32 4294967295, %s2674_s27   ;;  %s2674_s27 = sphi %s2737_s27, %s3242_s27   ;;  %s2670_s26 = sphi %s2735_s26, %s3241_s26   ;;  %s2666_s25 = sphi %s2733_s25, %s3240_s25   ;;  %s2662_s24 = sphi %s2731_s24, %s3239_s24  }
   0xf   : > { %s228_s29 = sshll.u32 %s2676_s28, 4  ;;  %p1934_p0 = scmp.ge.s32.totalorder %s2674_s27, 1  ;;  %s2757_s29 = int_to_ptr.vmem [resolvable:$true] %s228_s29 }
  0x10   : > { %p3207_p1 = scmp.eq.s32.totalorder %s2752_s30, 0  ;;  %p216_p2 = scmp.lt.s32.totalorder %s2674_s27, 3 }
  0x11   : > { %s2677_s9 = smov [#allocation8]   ;;  %s2678_s12 = smov [#allocation10]  }
  0x12   : > { %p2759_p3 = pnand %p1934_p0, %p216_p2  ;;  %s241_s10 = sshll.u32 %s2677_s9, 4  ;;  %s2772_s10 = int_to_ptr.vmem [resolvable:$true] %s241_s10 }
  0x13   : > { %s2774_s13 = sshll.u32 %s2678_s12, 4  ;;  %s3217_s2 = sld [smem:[#allocation20_spill]]  ;;  %s255_s13 = int_to_ptr.vmem [resolvable:$true] %s2774_s13 }
  0x14   : > { %s3215_s8 = scalar_select %p2759_p3, 1, 0 }
  0x15   : > { %p2222_p5 = pneg %p2759_p3 }
  0x17   : > { %p2768_p6 = pnand %p2222_p5, %p3207_p1 }
  0x19   : > { %s2420_s16 = scalar_lea.hbm %s3217_s2, 4096  ;;  %p2784_p8 = pneg %p2768_p6 }
  0x1a   : > { %p2421_p7 = scmp.ne.s32.totalorder %s3217_s2, %s2420_s16  ;;  %p2427_p11 = scmp.lt.u32.totalorder %s2420_s16, %s3217_s2 }
  0x1c   : > { %p2423_p9 = pnand %p2784_p8, %p2421_p7 }
  0x1e   : > { %p2424_p10 = pneg %p2423_p9 }
  0x20   : > { %p2429_p12 = pnand %p2427_p11, %p2424_p10 }
  0x22   : > { %2432 = shalt.err (!%p2429_p12)
}
  0x23   : > { %s2433_s22 = scalar_lea.vmem %s2757_s29, 4096  ;;  %p2441_p5 = scmp.lt.s32.totalorder %s2757_s29, %s2757_s29 }
  0x24   : > { %p2434_p13 = scmp.ne.s32.totalorder %s2757_s29, %s2433_s22  ;;  %p2442_p4 = scmp.lt.s32.totalorder %s2433_s22, %s2433_s22 }
  0x26   : > { %p2436_p0 = pnand %p2434_p13, %p2784_p8  ;;  %p2443_p7 = por %p2442_p4, %p2441_p5 }
  0x28   : > { %p2437_p2 = pneg %p2436_p0 }
  0x2a   : > { %p2444_p9 = pnand %p2443_p7, %p2437_p2 }
  0x2c   : > { %2447 = shalt.err (!%p2444_p9)
}
  0x2d   : > { %s2679_s23 = smov 256   ;;  %s2680_s28 = smov 16  }
  0x2e   : > { %2225 = dma.hbm_to_vmem [thread:$0]  (!%p2768_p6), %s3217_s2, 4096, %s2757_s29, [#allocation6], %s2679_s23, %s2679_s23, %s2680_s28  }
  0x2f   : > { %s3219_s3 = sld [smem:[#allocation21_spill]] }
  0x35   : > { %s2448_s16 = scalar_lea.hbm %s3219_s3, 1024 }
  0x36   : > { %p2449_p4 = scmp.ne.s32.totalorder %s3219_s3, %s2448_s16  ;;  %p2455_p12 = scmp.lt.u32.totalorder %s2448_s16, %s3219_s3 }
  0x38   : > { %p2451_p10 = pnand %p2449_p4, %p2784_p8 }
  0x3a   : > { %p2452_p11 = pneg %p2451_p10 }
  0x3c   : > { %p2457_p13 = pnand %p2455_p12, %p2452_p11 }
  0x3e   : > { %2460 = shalt.err (!%p2457_p13)
}
  0x3f   : > { %s2461_s29 = scalar_lea.vmem %s2772_s10, 1024  ;;  %p2469_p7 = scmp.lt.s32.totalorder %s2772_s10, %s2772_s10 }
  0x40   : > { %p2462_p0 = scmp.ne.s32.totalorder %s2772_s10, %s2461_s29  ;;  %p2470_p9 = scmp.lt.s32.totalorder %s2461_s29, %s2461_s29 }
  0x42   : > { %p2464_p2 = pnand %p2462_p0, %p2784_p8  ;;  %p2471_p4 = por %p2470_p9, %p2469_p7 }
  0x44   : > { %p2465_p5 = pneg %p2464_p2 }
  0x46   : > { %p2472_p10 = pnand %p2471_p4, %p2465_p5 }
  0x48   : > { %2475 = shalt.err (!%p2472_p10)
}
  0x49   : > { %s2681_s22 = smov 64   ;;  %s2682_s23 = smov 4  }
  0x4a   : > { %2228 = dma.hbm_to_vmem [thread:$0]  (!%p2768_p6), %s3219_s3, 1024, %s2772_s10, [#allocation9], %s2681_s22, %s2681_s22, %s2682_s23  }
  0x4b   : > { %s3220_s4 = sld [smem:[#allocation22_spill]] }
  0x51   : > { %s2476_s15 = scalar_lea.hbm %s3220_s4, 2048 }
  0x52   : > { %p2477_p11 = scmp.ne.s32.totalorder %s3220_s4, %s2476_s15  ;;  %p2483_p0 = scmp.lt.u32.totalorder %s2476_s15, %s3220_s4 }
  0x54   : > { %p2479_p12 = pnand %p2477_p11, %p2784_p8 }
  0x56   : > { %p2480_p13 = pneg %p2479_p12 }
  0x58   : > { %p2485_p2 = pnand %p2483_p0, %p2480_p13 }
  0x5a   : > { %2488 = shalt.err (!%p2485_p2)
}
  0x5b   : > { %s2489_s21 = scalar_lea.vmem %s255_s13, 2048  ;;  %p2497_p4 = scmp.lt.s32.totalorder %s255_s13, %s255_s13 }
  0x5c   : > { %p2490_p5 = scmp.ne.s32.totalorder %s255_s13, %s2489_s21  ;;  %p2498_p10 = scmp.lt.s32.totalorder %s2489_s21, %s2489_s21 }
  0x5e   : > { %p2492_p7 = pnand %p2490_p5, %p2784_p8  ;;  %p2499_p1 = por %p2498_p10, %p2497_p4 }
  0x60   : > { %p2493_p9 = pneg %p2492_p7 }
  0x62   : > { %p2500_p3 = pnand %p2499_p1, %p2493_p9 }
  0x64   : > { %2503 = shalt.err (!%p2500_p3)
}
  0x65   : > { %2231 = dma.hbm_to_vmem [thread:$0]  (!%p2768_p6), %s3220_s4, 2048, %s255_s13, [#allocation9], %s2681_s22, %s2681_s22, %s2682_s23  }
  0x66   : > { %s2683_s28 = smov [#allocation11]   ;;  %s3221_s5 = sld [smem:[#allocation23_spill]] }
  0x67   : > { %s267_s9 = sshll.u32 %s2683_s28, 4  ;;  %s268_s9 = int_to_ptr.vmem [resolvable:$true] %s267_s9 }
  0x6c   : > { %s2504_s15 = scalar_lea.hbm %s3221_s5, 1024 }
  0x6d   : > { %p2505_p1 = scmp.ne.s32.totalorder %s3221_s5, %s2504_s15  ;;  %p2511_p12 = scmp.lt.u32.totalorder %s2504_s15, %s3221_s5 }
  0x6f   : > { %p2507_p3 = pnand %p2505_p1, %p2784_p8 }
  0x71   : > { %p2508_p11 = pneg %p2507_p3 }
  0x73   : > { %p2513_p13 = pnand %p2511_p12, %p2508_p11 }
  0x75   : > { %2516 = shalt.err (!%p2513_p13)
}
  0x76   : > { %s2517_s13 = scalar_lea.vmem %s268_s9, 1024  ;;  %p2525_p7 = scmp.lt.s32.totalorder %s268_s9, %s268_s9 }
  0x77   : > { %p2518_p0 = scmp.ne.s32.totalorder %s268_s9, %s2517_s13  ;;  %p2526_p9 = scmp.lt.s32.totalorder %s2517_s13, %s2517_s13 }
  0x79   : > { %p2520_p2 = pnand %p2518_p0, %p2784_p8  ;;  %p2527_p4 = por %p2526_p9, %p2525_p7 }
  0x7b   : > { %p2521_p5 = pneg %p2520_p2 }
  0x7d   : > { %p2528_p10 = pnand %p2527_p4, %p2521_p5 }
  0x7f   : > { %2531 = shalt.err (!%p2528_p10)
}
  0x80   : > { %2234 = dma.hbm_to_vmem [thread:$0]  (!%p2768_p6), %s3221_s5, 1024, %s268_s9, [#allocation12], %s2681_s22, %s2681_s22, %s2682_s23  }
  0x81   : > { %s1933_s11 = sadd.s32 4294967294, %s2674_s27   ;;  %s2876_s19 = sadd.s32 1, %s2674_s27  }
  0x82   : > { %s32_s29 = ssub.s32 %s2674_s27, %s2876_s19  ;;  %s35_s28 = sadd.s32 1, %s2670_s26 }
  0x83   : > { %p33_p8 = scmp.eq.s32.totalorder %s32_s29, 0  ;;  %p42_p1 = scmp.ne.s32.totalorder %s2670_s26, %s2666_s25 }
  0x84   : > { %p43_p3 = scmp.eq.s32.totalorder %s2674_s27, 0  ;;  %p48_p11 = scmp.ne.s32.totalorder %s2666_s25, %s2662_s24 }
  0x85   : > { %s2887_s12 = scalar_select %p33_p8, %s2670_s26, %s35_s28  }
  0x86   : > { %p2889_p12 = por %p43_p3, %p42_p1  ;;  %p3223_p13 = scmp.eq.s32.totalorder %s2752_s30, 0 }
  0x87   : > { %p203_p0 = scmp.eq.s32.totalorder %s2752_s30, 1  ;;  %p209_p2 = scmp.eq.s32.totalorder %s1933_s11, 1 }
  0x88   : > { %p2895_p6 = por %p3223_p13, %p48_p11  ;;  %p2250_p5 = scmp.lt.s32.totalorder %s2674_s27, 2 }
  0x89   : > { %s284_s23 = sand.u32 1, %s2670_s26   ;;  %p2902_p7 = por %p203_p0, %p42_p1 }
  0x8a   : > { %s3224_s22 = scalar_select %p2895_p6, 1, 0 }
  0x8b   : > { %s3225_s9 = scalar_select %p2902_p7, 1, 0 }
  0x8c   : > { %p2906_p9 = por %p209_p2, %p48_p11  ;;  %s2910_s16 = sshll.u32 %s284_s23, 3 }
  0x8d   : > { %s1941_s17 = sshll.u32 %s2674_s27, 7  ;;  %s288_s21 = scalar_lea.vmem [#allocation2], %s2910_s16 }
  0x8e   : > { %s3226_s15 = scalar_select %p2906_p9, 1, 0 }
  0x8f   : > { %s2916_s13 = scalar_lea.hbm %s3199_s0, %s1941_s17  ;;  %s295_s10 = sshll.u32 %s288_s21, 4  ;;  %s2919_s10 = int_to_ptr.vmem [resolvable:$true] %s295_s10 }
  0x90   : > { %p2923_p4 = pnand %p2250_p5, %p2889_p12  ;;  %s2930_s18 = scalar_lea.hbm %s3200_s1, %s1941_s17 }
  0x91   : > { %s302_s20 = sand.u32 1, %s2674_s27   ;;  %s285_s2 = scalar_lea.sflag [#allocation3], %s284_s23 }
  0x92   : > { %s2532_s3 = scalar_lea.hbm %s2916_s13, 128  ;;  %p2534_p8 = pneg %p2923_p4 }
  0x93   : > { %p2533_p10 = scmp.ne.s32.totalorder %s2916_s13, %s2532_s3  ;;  %s2537_s4 = scalar_lea.hbm %s3199_s0, 256 }
  0x94   : > { %p2538_p11 = scmp.lt.u32.totalorder %s2916_s13, %s3199_s0  ;;  %p2539_p12 = scmp.lt.u32.totalorder %s2537_s4, %s2532_s3 }
  0x95   : > { %p2535_p1 = pnand %p2534_p8, %p2533_p10  ;;  %p2541_p0 = scmp.lt.u32.totalorder %s2532_s3, %s2916_s13 }
  0x96   : > { %p2540_p13 = por %p2539_p12, %p2538_p11 }
  0x97   : > { %p2536_p3 = pneg %p2535_p1 }
  0x98   : > { %p2542_p2 = por %p2541_p0, %p2540_p13 }
  0x9a   : > { %p2543_p5 = pnand %p2542_p2, %p2536_p3 }
  0x9c   : > { %2546 = shalt.err (!%p2543_p5)
}
  0x9d   : > { %s2547_s23 = scalar_lea.vmem %s2919_s10, 128  ;;  %s2684_s17 = smov [#allocation2]  }
  0x9e   : > { %p2548_p10 = scmp.ne.s32.totalorder %s2919_s10, %s2547_s23  ;;  %s2552_s28 = sshll.u32 %s2684_s17, 4  ;;  %s2553_s28 = int_to_ptr.vmem [resolvable:$false] %s2552_s28 }
  0x9f   : > { %s2554_s5 = scalar_lea.vmem %s2553_s28, 256  ;;  %p2555_p7 = scmp.lt.s32.totalorder %s2919_s10, %s2553_s28 }
  0xa0   : > { %p2550_p1 = pnand %p2548_p10, %p2534_p8  ;;  %p2556_p11 = scmp.lt.s32.totalorder %s2554_s5, %s2547_s23 }
  0xa2   : > { %p2551_p9 = pneg %p2550_p1  ;;  %p2557_p12 = por %p2556_p11, %p2555_p7 }
  0xa4   : > { %p2558_p13 = pnand %p2557_p12, %p2551_p9 }
  0xa6   : > { %2561 = shalt.err (!%p2558_p13)
}
  0xa7   : > { %2238 = dma.hbm_to_vmem [thread:$0]  (!%p2923_p4), %s2916_s13, 128, %s2919_s10, %s285_s2  }
  0xa8   : > { %s306_s3 = scalar_lea.vmem [#allocation5], %s2910_s16  ;;  %s303_s14 = scalar_lea.sflag [#allocation6], %s302_s20 }
  0xa9   : > { %s313_s4 = sshll.u32 %s306_s3, 4  ;;  %s2562_s21 = scalar_lea.hbm %s2930_s18, 128  ;;  %s314_s4 = int_to_ptr.vmem [resolvable:$true] %s313_s4 }
  0xaa   : > { %p2563_p7 = scmp.ne.s32.totalorder %s2930_s18, %s2562_s21  ;;  %s2567_s17 = scalar_lea.hbm %s3200_s1, 256 }
  0xab   : > { %p2568_p0 = scmp.lt.u32.totalorder %s2930_s18, %s3200_s1  ;;  %p2569_p2 = scmp.lt.u32.totalorder %s2567_s17, %s2562_s21 }
  0xac   : > { %p2565_p9 = pnand %p2563_p7, %p2534_p8  ;;  %p2571_p10 = scmp.lt.u32.totalorder %s2562_s21, %s2930_s18 }
  0xad   : > { %p2570_p5 = por %p2569_p2, %p2568_p0 }
  0xae   : > { %p2566_p3 = pneg %p2565_p9 }
  0xaf   : > { %p2572_p1 = por %p2571_p10, %p2570_p5 }
  0xb1   : > { %p2573_p11 = pnand %p2572_p1, %p2566_p3 }
  0xb3   : > { %2576 = shalt.err (!%p2573_p11)
}
  0xb4   : > { %s2577_s2 = scalar_lea.vmem %s314_s4, 128  ;;  %s2685_s16 = smov [#allocation5]  }
  0xb5   : > { %p2578_p12 = scmp.ne.s32.totalorder %s314_s4, %s2577_s2  ;;  %s2582_s13 = sshll.u32 %s2685_s16, 4  ;;  %s2583_s13 = int_to_ptr.vmem [resolvable:$false] %s2582_s13 }
  0xb6   : > { %s2584_s10 = scalar_lea.vmem %s2583_s13, 256  ;;  %p2585_p9 = scmp.lt.s32.totalorder %s314_s4, %s2583_s13 }
  0xb7   : > { %p2580_p13 = pnand %p2578_p12, %p2534_p8  ;;  %p2586_p6 = scmp.lt.s32.totalorder %s2584_s10, %s2577_s2 }
  0xb9   : > { %p2581_p7 = pneg %p2580_p13  ;;  %p2587_p0 = por %p2586_p6, %p2585_p9 }
  0xbb   : > { %p2588_p2 = pnand %p2587_p0, %p2581_p7 }
  0xbd   : > { %2591 = shalt.err (!%p2588_p2)
}
  0xbe   : > { %2241 = dma.hbm_to_vmem [thread:$0]  (!%p2923_p4), %s2930_s18, 128, %s314_s4, %s303_s14  }
  0xbf   : > { %p3228_p3 = scmp.ne.s32.totalorder %s3215_s8, 0 }
  0xc0   : > { %s2983_s20 = sand.u32 (!%p3228_p3), 1, %s2666_s25   ;;  %p3229_p6 = scmp.ne.s32.totalorder (!%p3228_p3), %s3224_s22, 0 }
  0xc1   : > { %322 = sbr.rel (%p3228_p3) target bundleno = 1995 (0x7cb), region = 48  ;;  %s2986_s3 = sshll.u32 (!%p3228_p3), %s2983_s20, 3 }
  0xc2   : > { %s325_s21 = scalar_lea.sflag (!%p3228_p3), [#allocation3], %s2983_s20  ;;  %s328_s29 = scalar_lea.vmem (!%p3228_p3), [#allocation2], %s2986_s3 }
  0xc8   : > { %2637 = dma.done.wait (%p3229_p6), %s325_s21, 128  }
  0xc9   : > { %2639 = vsyncadd (%p3229_p6), %s325_s21, 4294967168  ;;  %s333_s8 = sand.u32 1, %s2752_s30   ;;  %s337_s18 = scalar_lea.vmem [#allocation5], %s2986_s3 }
  0xca   : > { %s334_s11 = scalar_lea.sflag [#allocation6], %s333_s8 }
  0xcb   : > { %2641 = dma.done.wait (%p3229_p6), %s334_s11, 128  }
  0xcc   : > { %2643 = vsyncadd (%p3229_p6), %s334_s11, 4294967168  ;;  %p3230_p4 = scmp.eq.s32.totalorder %s2752_s30, 0 }
  0xce   : > { %2645 = dma.done.wait (%p3230_p4), [#allocation6], 4096   ;;  %p3231_p8 = pmov %p3230_p4 }
  0xcf   : > { %p3232_p5 = pmov %p3230_p4 }
  0xd0   : > { %2647 = vsyncadd (%p3231_p8), [#allocation6], 4294963200 }
  0xd1   : > { %2649 = dma.done.wait (%p3232_p5), [#allocation9], 3072   ;;  %p3233_p10 = pmov %p3230_p4 }
  0xd2   : > { %p3234_p1 = pmov %p3230_p4 }
  0xd3   : > { %2651 = vsyncadd (%p3233_p10), [#allocation9], 4294964224 }
  0xd4   : > { %2653 = dma.done.wait (%p3234_p1), [#allocation12], 1024   ;;  %p3235_p11 = pmov %p3234_p1 }
  0xd5   : > { %v3012_v0 = vld [vmem:[%s328_s29] sm:$0xff]  ;;  %v2686_v32 = vmov 0   ;;  %v3018_v35 = vld [vmem:[%s337_s18] sm:$0xff]  ;;  %v2687_v42 = vmov 0.0   ;;  %vm2688_vm0 = vmmov 0   ;;  %vm758_vm1 = vcmask 1043456  }
  0xd6   : > { %2655 = vsyncadd (%p3235_p11), [#allocation12], 4294966272  ;;  %v391_v1 = vmul.f32 %v3012_v0, %v3012_v0  ;;  %v2300_v2 = vld [vmem:[#allocation7 + $0x4] ss:$16 sps:$4 sm:$0xff]   ;;  %v2302_v3 = vld [vmem:[#allocation7 + $0xc] ss:$16 sps:$4 sm:$0xff]   ;;  %630 = vmatprep.mubr.bf16.mxu0 %v2686_v32  ;;  %671 = vmatprep.mubr.bf16.mxu1 %v2686_v32  ;;  %v398_v36 = vmul.f32 %v3018_v35, %v3018_v35 }
  0xd7   : > { %v2304_v4 = vld [vmem:[#allocation7] ss:$16 sps:$4 sm:$0xff]   ;;  %v2305_v5 = vld [vmem:[#allocation7 + $0x8] ss:$16 sps:$4 sm:$0xff]   ;;  %598 = vmatprep.subr.bf16.mxu0 %v2300_v2  ;;  %v2306_v6 = vld [vmem:[#allocation7 + $0x24] ss:$16 sps:$4 sm:$0xff]   ;;  %639 = vmatprep.subr.bf16.mxu1 %v2302_v3 }
  0xd8   : > { %392 = vadd.xlane.f32.xlu0 %v391_v1  ;;  %599 = vmatpush1.bf16.msra.mxu0 %v2304_v4  ;;  %v2308_v7 = vld [vmem:[#allocation7 + $0x2c] ss:$16 sps:$4 sm:$0xff]   ;;  %v2310_v8 = vld [vmem:[#allocation7 + $0x20] ss:$16 sps:$4 sm:$0xff]   ;;  %v2311_v9 = vld [vmem:[#allocation7 + $0x28] ss:$16 sps:$4 sm:$0xff]  }
  0xd9   : > { %640 = vmatpush1.bf16.msra.mxu1 %v2305_v5  ;;  %600 = vmatprep.subr.bf16.mxu0 %v2306_v6  ;;  %v2312_v10 = vld [vmem:[#allocation7 + $0x44] ss:$16 sps:$4 sm:$0xff]   ;;  %v2314_v11 = vld [vmem:[#allocation7 + $0x4c] ss:$16 sps:$4 sm:$0xff]   ;;  %v2316_v12 = vld [vmem:[#allocation7 + $0x40] ss:$16 sps:$4 sm:$0xff]  }
  0xda   : > { %641 = vmatprep.subr.bf16.mxu1 %v2308_v7  ;;  %v2317_v13 = vld [vmem:[#allocation7 + $0x48] ss:$16 sps:$4 sm:$0xff]   ;;  %v2318_v14 = vld [vmem:[#allocation7 + $0x64] ss:$16 sps:$4 sm:$0xff]   ;;  %v2320_v15 = vld [vmem:[#allocation7 + $0x6c] ss:$16 sps:$4 sm:$0xff]   ;;  %399 = vadd.xlane.f32.xlu1 %v398_v36 }
  0xdb   : > { %v2322_v16 = vld [vmem:[#allocation7 + $0x60] ss:$16 sps:$4 sm:$0xff]   ;;  %v2323_v17 = vld [vmem:[#allocation7 + $0x68] ss:$16 sps:$4 sm:$0xff]   ;;  %v2324_v18 = vld [vmem:[#allocation7 + $0x84] ss:$16 sps:$4 sm:$0xff]  }
  0xdc   : > { %601 = vmatpush1.bf16.msra.mxu0 %v2310_v8  ;;  %v2326_v19 = vld [vmem:[#allocation7 + $0x8c] ss:$16 sps:$4 sm:$0xff]   ;;  %v2328_v20 = vld [vmem:[#allocation7 + $0x80] ss:$16 sps:$4 sm:$0xff]   ;;  %v2329_v21 = vld [vmem:[#allocation7 + $0x88] ss:$16 sps:$4 sm:$0xff]  }
  0xdd   : > { %642 = vmatpush1.bf16.msra.mxu1 %v2311_v9  ;;  %602 = vmatprep.subr.bf16.mxu0 %v2312_v10  ;;  %v2330_v22 = vld [vmem:[#allocation7 + $0xa4] ss:$16 sps:$4 sm:$0xff]   ;;  %v2332_v23 = vld [vmem:[#allocation7 + $0xac] ss:$16 sps:$4 sm:$0xff]   ;;  %v2334_v24 = vld [vmem:[#allocation7 + $0xa0] ss:$16 sps:$4 sm:$0xff]  }
  0xde   : > { %643 = vmatprep.subr.bf16.mxu1 %v2314_v11  ;;  %v2335_v25 = vld [vmem:[#allocation7 + $0xa8] ss:$16 sps:$4 sm:$0xff]   ;;  %v2336_v26 = vld [vmem:[#allocation7 + $0xc4] ss:$16 sps:$4 sm:$0xff]   ;;  %v2338_v27 = vld [vmem:[#allocation7 + $0xcc] ss:$16 sps:$4 sm:$0xff]  }
  0xdf   : > { %v2340_v28 = vld [vmem:[#allocation7 + $0xc0] ss:$16 sps:$4 sm:$0xff]   ;;  %v2341_v29 = vld [vmem:[#allocation7 + $0xc8] ss:$16 sps:$4 sm:$0xff]   ;;  %v2342_v30 = vld [vmem:[#allocation7 + $0xe4] ss:$16 sps:$4 sm:$0xff]  }
  0xe0   : > { %603 = vmatpush1.bf16.msra.mxu0 %v2316_v12  ;;  %v2344_v31 = vld [vmem:[#allocation7 + $0xec] ss:$16 sps:$4 sm:$0xff]   ;;  %v2346_v33 = vld [vmem:[#allocation7 + $0xe0] ss:$16 sps:$4 sm:$0xff]   ;;  %v2347_v34 = vld [vmem:[#allocation7 + $0xe8] ss:$16 sps:$4 sm:$0xff]  }
  0xe1   : > { %644 = vmatpush1.bf16.msra.mxu1 %v2317_v13  ;;  %604 = vmatprep.subr.bf16.mxu0 %v2318_v14  ;;  %v1986_v43 = vld [vmem:[%s3205_s6 + $0x2] ss:$0 sm:$0xff]  ;;  %v1985_v44 = vld [vmem:[%s3205_s6 + $0x1] ss:$0 sm:$0xff]  ;;  %v1984_v56 = vld [vmem:[%s3205_s6] ss:$0 sm:$0xff] }
  0xe2   : > { %645 = vmatprep.subr.bf16.mxu1 %v2320_v15  ;;  %v2348_v60 = vld [vmem:[#allocation8] sm:$0xff]   ;;  %v2349_v62 = vld [vmem:[#allocation8 + $0x8] sm:$0xff]   ;;  %v2351_v2 = vld [vmem:[#allocation8 + $0x18] sm:$0xff]   ;;  %vm741_vm2 = vcmask 64512   ;;  %s2041_s4 = sshll.u32 %s2752_s30, 7  ;;  %s388_s14 = scalar_lea.vmem [#allocation13], %s2986_s3 }
  0xe3   : > { %v2352_v3 = vld [vmem:[#allocation8 + $0x20] sm:$0xff]   ;;  %v2353_v4 = vld [vmem:[#allocation8 + $0x28] sm:$0xff]   ;;  %v2354_v6 = vld [vmem:[#allocation8 + $0x30] sm:$0xff]   ;;  %s1802_s23 = sshll.u32 %s388_s14, 4  ;;  %s3154_s5 = scalar_lea.hbm %s3206_s7, %s2041_s4  ;;  %s3156_s23 = int_to_ptr.vmem [resolvable:$true] %s1802_s23 }
  0xe4   : > { %605 = vmatpush1.bf16.msra.mxu0 %v2322_v16  ;;  %v2355_v8 = vld [vmem:[#allocation8 + $0x38] sm:$0xff]   ;;  %v2356_v10 = vld [vmem:[#allocation10] sm:$0xff]   ;;  %v2357_v11 = vld [vmem:[#allocation10 + $0x8] sm:$0xff]   ;;  %s1789_s30 = scalar_lea.sflag [#allocation4], %s2983_s20  ;;  %s2592_s3 = scalar_lea.vmem %s3156_s23, 128 }
  0xe5   : > { %646 = vmatpush1.bf16.msra.mxu1 %v2323_v17  ;;  %606 = vmatprep.subr.bf16.mxu0 %v2324_v18  ;;  %v2358_v12 = vld [vmem:[#allocation10 + $0x10] sm:$0xff]   ;;  %v2359_v13 = vld [vmem:[#allocation10 + $0x18] sm:$0xff]   ;;  %v2360_v14 = vld [vmem:[#allocation10 + $0x20] sm:$0xff]   ;;  %p2593_p12 = scmp.ne.s32.totalorder %s3156_s23, %s2592_s3  ;;  %p3236_p13 = scmp.ne.s32.totalorder %s3225_s9, 0 }
  0xe6   : > { %647 = vmatprep.subr.bf16.mxu1 %v2326_v19  ;;  %v2361_v15 = vld [vmem:[#allocation10 + $0x28] sm:$0xff]   ;;  %v2362_v16 = vld [vmem:[#allocation10 + $0x30] sm:$0xff]   ;;  %v2363_v17 = vld [vmem:[#allocation10 + $0x38] sm:$0xff]   ;;  %s2690_s2 = smov [#allocation13]  }
  0xe7   : > { %p2594_p7 = pnand %p2593_p12, %p3236_p13  ;;  %s2596_s16 = sshll.u32 %s2690_s2, 4  ;;  %s2597_s16 = int_to_ptr.vmem [resolvable:$false] %s2596_s16 }
  0xe8   : > { %607 = vmatpush1.bf16.msra.mxu0 %v2328_v20  ;;  %s2598_s13 = scalar_lea.vmem %s2597_s16, 256  ;;  %p2599_p0 = scmp.lt.s32.totalorder %s3156_s23, %s2597_s16 }
  0xe9   : > { %648 = vmatpush1.bf16.msra.mxu1 %v2329_v21  ;;  %608 = vmatprep.subr.bf16.mxu0 %v2330_v22  ;;  %v2689_v22 = vmov 1966171168   ;;  %p2595_p9 = pneg %p2594_p7  ;;  %p2600_p2 = scmp.lt.s32.totalorder %s2598_s13, %s2592_s3 }
  0xea   : > { %649 = vmatprep.subr.bf16.mxu1 %v2332_v23  ;;  %v909_v23 = vunpack.c.l.s4 %v2689_v22 }
  0xeb   : > { %p2601_p3 = por %p2600_p2, %p2599_p0 }
  0xec   : > { %609 = vmatpush1.bf16.msra.mxu0 %v2334_v24  ;;  %v911_v24 = vlaneseq }
  0xed   : > { %650 = vmatpush1.bf16.msra.mxu1 %v2335_v25  ;;  %610 = vmatprep.subr.bf16.mxu0 %v2336_v26  ;;  %p2602_p6 = pnand %p2601_p3, %p2595_p9 }
  0xee   : > { %651 = vmatprep.subr.bf16.mxu1 %v2338_v27  ;;  %v910_v27 = vunpack.c.0.s8 %v909_v23 }
  0xf0   : > { %611 = vmatpush1.bf16.msra.mxu0 %v2340_v28  ;;  %v3057_v28 = vshrl.u32 %v911_v24, 7 }
  0xf1   : > { %652 = vmatpush1.bf16.msra.mxu1 %v2341_v29  ;;  %612 = vmatprep.subr.bf16.mxu0 %v2342_v30 }
  0xf2   : > { %653 = vmatprep.subr.bf16.mxu1 %v2344_v31  ;;  %v3060_v29 = vsub.s32 %v910_v27, %v3057_v28 }
  0xf4   : > { %613 = vmatpush1.bf16.msra.mxu0 %v2346_v33 }
  0xf5   : > { %654 = vmatpush1.bf16.msra.mxu1 %v2347_v34  ;;  %2098 = vmatprep.subr.bf16.mxu0 %v2687_v42 }
  0xf6   : > { %2104 = vmatprep.subr.bf16.mxu1 %v2687_v42 }
 0x165   : > { %v393_v37 = vpop.xlane.xlu0 %392 }
 0x166   : > { %v394_v38 = vmax.f32 %v393_v37, 1e-24 }
 0x167   : > { %v400_v63 = vpop.xlane.xlu1 %399 }
 0x168   : > { %2380 = vrsqrt.f32 %v394_v38  ;;  %v401_v1 = vmax.f32 %v400_v63, 1e-24 }
 0x16a   : > { %2382 = vrsqrt.f32 %v401_v1 }
 0x172   : > { %v2381_v39 = vpop.eup %2380 }
 0x173   : > { %v396_v40 = vmul.f32 %v2381_v39, %v3012_v0  ;;  %v2350_v0 = vld [vmem:[#allocation8 + $0x10] sm:$0xff]  }
 0x174   : > { %v2383_v5 = vpop.eup %2382 }
 0x175   : > { %v404_v41 = vpack.c.bf16 %v396_v40, %v396_v40  ;;  %v403_v7 = vmul.f32 %v2383_v5, %v3018_v35 }
 0x177   : > { %631 = vmatmul.mubr.bf16.vlgmr.msra.gmra.mrb[0].mxu0 %v404_v41  ;;  %672 = vmatmul.mubr.bf16.vlgmr.msra.gmra.mrb[0].mxu1 %v404_v41  ;;  %v405_v9 = vpack.c.bf16 %v403_v7, %v403_v7  ;;  %v3072_v41 = vsub.s32 0, %v3057_v28 }
 0x178   : > { %2100 = vmatprep.mubr.msk.bf16.mxu0 %vm2688_vm0, %v2687_v42  ;;  %2106 = vmatprep.mubr.msk.bf16.mxu1 %vm2688_vm0, %v2687_v42 }
 0x24a   : > { %v632_v45 = vpop.f32.mrb[0].mxu0  ;;  %v673_v46 = vpop.f32.mrb[0].mxu1 }
 0x24b   : > { %v697_v47 = vadd.f32 %v1986_v43, %v673_v46  ;;  %v634_v48 = vpop.f32.mrb[1].mxu0  ;;  %v3035_v49 = vpop.f32.mrb[1].mxu1  ;;  %v685_v59 = vadd.f32 %v1984_v56, %v632_v45 }
 0x24c   : > { %v691_v50 = vadd.f32 %v1985_v44, %v634_v48  ;;  %v636_v51 = vpop.f32.mrb[2].mxu0  ;;  %v677_v52 = vpop.f32.mrb[2].mxu1  ;;  %v907_v30 = vcombine.high %v3035_v49, %v3035_v49  ;;  %v914_v31 = vrot.slane %v3035_v49, %v3060_v29 }
 0x24d   : > { %v754_v53 = vpack.c.bf16 %v697_v47, %v697_v47  ;;  %v637_v54 = vpop.f32.mrb[3].mxu0  ;;  %v678_v55 = vpop.f32.mrb[3].mxu1  ;;  %v698_v61 = vpack.c.bf16 %v685_v59, %v685_v59 }
 0x24e   : > { %v699_v57 = vpack.c.bf16 %v691_v50, %v691_v50  ;;  %v921_v32 = vrot.slane %v907_v30, %v3060_v29  ;;  %v922_v33 = vcombine.high %v914_v31, %v914_v31  ;;  %v930_v35 = vrot.slane %v914_v31, %v3060_v29  ;;  %v1996_v54 = vld [vmem:[%s3205_s6 + $0x3] ss:$0 sm:$0xff] }
 0x24f   : > { %v760_v58 = vsel %vm758_vm1, %v754_v53, 0 }
 0x250   : > { %2099 = vmatpush3.bf16.xpose.msra.mxu0 %v699_v57  ;;  %2105 = vmatpush3.bf16.msra.mxu1 %v760_v58  ;;  %v923_v34 = vcombine.high %v921_v32, %v921_v32  ;;  %v944_v36 = vrot.slane %v922_v33, %v3060_v29  ;;  %v937_v37 = vrot.slane %v921_v32, %v3060_v29 }
 0x251   : > { %2110 = vmatprep.subr.bf16.mxu0 %v2687_v42  ;;  %2130 = vmatprep.subr.bf16.mxu1 %v2687_v42  ;;  %v952_v39 = vcombine.high %v930_v35, %v930_v35  ;;  %v959_v45 = vrot.slane %v930_v35, %v3072_v41 }
 0x252   : > { %v951_v38 = vrot.slane %v923_v34, %v3060_v29  ;;  %v954_v40 = vcombine.high %v944_v36, %v944_v36  ;;  %v953_v43 = vcombine.high %v937_v37, %v937_v37  ;;  %v963_v46 = vrot.slane %v944_v36, %v3072_v41 }
 0x253   : > { %v967_v47 = vrot.slane %v952_v39, %v3072_v41  ;;  %v975_v49 = vrot.slane %v937_v37, %v3072_v41 }
 0x254   : > { %v955_v44 = vcombine.high %v951_v38, %v951_v38  ;;  %v971_v48 = vrot.slane %v954_v40, %v3072_v41  ;;  %v979_v50 = vrot.slane %v951_v38, %v3072_v41  ;;  %v983_v51 = vrot.slane %v953_v43, %v3072_v41 }
 0x256   : > { %v987_v52 = vrot.slane %v955_v44, %v3072_v41 }
 0x257   : > { %2101 = vmatmul.mubr.bf16.vlgmr.msra.gmra.mrb[4].mxu0 %v698_v61 }
 0x258   : > { %2111 = vmatpush3.bf16.msra.mxu0 %v2348_v60  ;;  %2126 = vmatprep.mubr.msk.bf16.mxu0 %vm2688_vm0, %v2687_v42 }
 0x259   : > { %2112 = vmatprep.subr.bf16.mxu0 %v2687_v42 }
 0x25c   : > { %2113 = vmatpush3.bf16.msra.mxu0 %v2349_v62 }
 0x25d   : > { %2114 = vmatprep.subr.bf16.mxu0 %v2687_v42 }
 0x260   : > { %2115 = vmatpush3.bf16.msra.mxu0 %v2350_v0 }
 0x261   : > { %2116 = vmatprep.subr.bf16.mxu0 %v2687_v42 }
 0x264   : > { %2117 = vmatpush3.bf16.msra.mxu0 %v2351_v2 }
 0x265   : > { %2118 = vmatprep.subr.bf16.mxu0 %v2687_v42 }
 0x268   : > { %2119 = vmatpush3.bf16.msra.mxu0 %v2352_v3 }
 0x269   : > { %2120 = vmatprep.subr.bf16.mxu0 %v2687_v42 }
 0x26c   : > { %2121 = vmatpush3.bf16.msra.mxu0 %v2353_v4 }
 0x26d   : > { %2122 = vmatprep.subr.bf16.mxu0 %v2687_v42 }
 0x270   : > { %2123 = vmatpush3.bf16.msra.mxu0 %v2354_v6 }
 0x271   : > { %2124 = vmatprep.subr.bf16.mxu0 %v2687_v42 }
 0x274   : > { %2125 = vmatpush3.bf16.msra.mxu0 %v2355_v8 }
 0x275   : > { %2150 = vmatprep.subr.bf16.mxu0 %v2356_v10 }
 0x277   : > { %2127 = vmatmul.mubr.bf16.vlgmr.msra.gmra.mrb[8].mxu0 %v405_v9 }
 0x278   : > { %2151 = vmatpush3.bf16.msra.mxu0 %v2356_v10 }
 0x279   : > { %2152 = vmatprep.subr.bf16.mxu0 %v2357_v11 }
 0x27c   : > { %2153 = vmatpush3.bf16.msra.mxu0 %v2357_v11 }
 0x27d   : > { %2154 = vmatprep.subr.bf16.mxu0 %v2358_v12 }
 0x280   : > { %2155 = vmatpush3.bf16.msra.mxu0 %v2358_v12 }
 0x281   : > { %2156 = vmatprep.subr.bf16.mxu0 %v2359_v13 }
 0x284   : > { %2157 = vmatpush3.bf16.msra.mxu0 %v2359_v13 }
 0x285   : > { %2158 = vmatprep.subr.bf16.mxu0 %v2360_v14 }
 0x288   : > { %2159 = vmatpush3.bf16.msra.mxu0 %v2360_v14 }
 0x289   : > { %2160 = vmatprep.subr.bf16.mxu0 %v2361_v15 }
 0x28c   : > { %2161 = vmatpush3.bf16.msra.mxu0 %v2361_v15 }
 0x28d   : > { %2162 = vmatprep.subr.bf16.mxu0 %v2362_v16 }
 0x290   : > { %2163 = vmatpush3.bf16.msra.mxu0 %v2362_v16 }
 0x291   : > { %2164 = vmatprep.subr.bf16.mxu0 %v2363_v17 }
 0x294   : > { %2165 = vmatpush3.bf16.msra.mxu0 %v2363_v17 }
 0x32a   : > { %v734_v18 = vpop.f32.mrb[4].mxu0 }
 0x32b   : > { %v3052_v19 = vmul.f32 0.088388346, %v734_v18  ;;  %v2102_v20 = vpop.f32.mrb[5].mxu0 }
 0x32c   : > { %v737_v21 = vpop.f32.mrb[6].mxu0 }
 0x32d   : > { %v2103_v25 = vpop.f32.mrb[7].mxu0  ;;  %v742_v26 = vsel %vm741_vm2, %v3052_v19, -inf }
 0x32e   : > { %743 = vmax.xlane.f32.xlu0 %v742_v26 }
 0x34a   : > { %v900_v53 = vpop.f32.mrb[8].mxu0 }
 0x34b   : > { %v996_v55 = vadd.f32 %v959_v45, %v900_v53  ;;  %v997_v56 = vadd.f32 %v963_v46, %v900_v53  ;;  %v998_v57 = vadd.f32 %v967_v47, %v900_v53  ;;  %v999_v58 = vadd.f32 %v971_v48, %v900_v53  ;;  %v2128_v59 = vpop.f32.mrb[9].mxu0 }
 0x34c   : > { %v1000_v60 = vadd.f32 %v975_v49, %v900_v53  ;;  %v1001_v61 = vadd.f32 %v979_v50, %v900_v53  ;;  %v1002_v62 = vadd.f32 %v983_v51, %v900_v53  ;;  %v1003_v63 = vadd.f32 %v987_v52, %v900_v53  ;;  %v903_v0 = vpop.f32.mrb[10].mxu0  ;;  %v2364_v51 = vld [vmem:[#allocation10 + $0x40] sm:$0xff]   ;;  %v2365_v53 = vld [vmem:[#allocation10 + $0x48] sm:$0xff]   ;;  %v2371_v59 = vld [vmem:[#allocation10 + $0x78] sm:$0xff]  }
 0x34d   : > { %v1009_v1 = vadd.f32 %v1996_v54, %v996_v55  ;;  %v1010_v2 = vadd.f32 %v1996_v54, %v997_v56  ;;  %v1011_v3 = vadd.f32 %v1996_v54, %v998_v57  ;;  %v1012_v4 = vadd.f32 %v1996_v54, %v999_v58  ;;  %v2129_v5 = vpop.f32.mrb[11].mxu0  ;;  %v2367_v55 = vld [vmem:[#allocation10 + $0x58] sm:$0xff]   ;;  %v2368_v56 = vld [vmem:[#allocation10 + $0x60] sm:$0xff]   ;;  %v2369_v57 = vld [vmem:[#allocation10 + $0x68] sm:$0xff]  }
 0x34e   : > { %v1013_v6 = vadd.f32 %v1996_v54, %v1000_v60  ;;  %v1014_v7 = vadd.f32 %v1996_v54, %v1001_v61  ;;  %v1015_v8 = vadd.f32 %v1996_v54, %v1002_v62  ;;  %v1016_v9 = vadd.f32 %v1996_v54, %v1003_v63  ;;  %v2366_v54 = vld [vmem:[#allocation10 + $0x50] sm:$0xff]   ;;  %v2372_v60 = vld [vmem:[#allocation11] sm:$0xff]   ;;  %v2373_v0 = vld [vmem:[#allocation11 + $0x8] sm:$0xff]  }
 0x34f   : > { %vm1017_vm3 = vcmp.gt.f32.partialorder %v1009_v1, 0.0  ;;  %vm1018_vm4 = vcmp.gt.f32.partialorder %v1010_v2, 0.0  ;;  %v1025_v10 = vmul.f32 0.2, %v1009_v1  ;;  %v1026_v11 = vmul.f32 0.2, %v1010_v2 }
 0x350   : > { %vm1019_vm5 = vcmp.gt.f32.partialorder %v1011_v3, 0.0  ;;  %vm1020_vm6 = vcmp.gt.f32.partialorder %v1012_v4, 0.0  ;;  %v1027_v12 = vmul.f32 0.2, %v1011_v3  ;;  %v1028_v13 = vmul.f32 0.2, %v1012_v4 }
 0x351   : > { %v1033_v14 = vsel %vm1017_vm3, %v1009_v1, %v1025_v10  ;;  %v1034_v15 = vsel %vm1018_vm4, %v1010_v2, %v1026_v11  ;;  %vm1021_vm7 = vcmp.gt.f32.partialorder %v1013_v6, 0.0  ;;  %vm1022_vm8 = vcmp.gt.f32.partialorder %v1014_v7, 0.0  ;;  %v2370_v58 = vld [vmem:[#allocation10 + $0x70] sm:$0xff]   ;;  %v2377_v5 = vld [vmem:[#allocation11 + $0x28] sm:$0xff]  }
 0x352   : > { %v2044_v16 = vpack.c.bf16 %v1034_v15, %v1033_v14  ;;  %v1035_v17 = vsel %vm1019_vm5, %v1011_v3, %v1027_v12  ;;  %v1036_v18 = vsel %vm1020_vm6, %v1012_v4, %v1028_v13  ;;  %v1029_v20 = vmul.f32 0.2, %v1013_v6  ;;  %v2374_v3 = vld [vmem:[#allocation11 + $0x10] sm:$0xff]   ;;  %v2375_v4 = vld [vmem:[#allocation11 + $0x18] sm:$0xff]  }
 0x353   : > { %v2045_v21 = vpack.c.bf16 %v1036_v18, %v1035_v17  ;;  %v1030_v22 = vmul.f32 0.2, %v1014_v7  ;;  %vm1023_vm9 = vcmp.gt.f32.partialorder %v1015_v8, 0.0  ;;  %vm1024_vm10 = vcmp.gt.f32.partialorder %v1016_v9, 0.0 }
 0x354   : > { %2166 = vmatprep.mubr.bf16.mxu0 %v2044_v16  ;;  %v1037_v23 = vsel %vm1021_vm7, %v1013_v6, %v1029_v20  ;;  %v1031_v25 = vmul.f32 0.2, %v1015_v8  ;;  %v1032_v26 = vmul.f32 0.2, %v1016_v9  ;;  %v2378_v6 = vld [vmem:[#allocation11 + $0x30] sm:$0xff]  }
 0x355   : > { %2167 = vmatmul.mubr.bf16.vlgmr.msra.gmra.mrb[12].mxu0 %v2045_v21  ;;  %v1038_v27 = vsel %vm1022_vm8, %v1014_v7, %v1030_v22  ;;  %v2379_v7 = vld [vmem:[#allocation11 + $0x38] sm:$0xff]  }
 0x356   : > { %v2046_v30 = vpack.c.bf16 %v1038_v27, %v1037_v23  ;;  %v1039_v31 = vsel %vm1023_vm9, %v1015_v8, %v1031_v25  ;;  %v1040_v32 = vsel %vm1024_vm10, %v1016_v9, %v1032_v26 }
 0x357   : > { %v2047_v33 = vpack.c.bf16 %v1040_v32, %v1039_v31 }
 0x358   : > { %2170 = vmatprep.mubr.bf16.mxu0 %v2046_v30  ;;  %v2017_v30 = vld [vmem:[%s3205_s6 + $0x4] ss:$0 sm:$0xff] }
 0x35d   : > { %2171 = vmatmul.mubr.bf16.gmra.mrb[16].mxu0 %v2047_v33 }
 0x3bb   : > { %v744_v34 = vpop.xlane.xlu0 %743 }
 0x3bc   : > { %v745_v35 = vsub.f32 %v3052_v19, %v744_v34 }
 0x3be   : > { %v746_v36 = vmul.f32 1.442695, %v745_v35 }
 0x3c0   : > { %2384 = vpow2.f32 %v746_v36 }
 0x3ca   : > { %v2385_v37 = vpop.eup %2384 }
 0x3cb   : > { %v748_v38 = vsel %vm741_vm2, %v2385_v37, 0.0 }
 0x3cc   : > { %749 = vadd.xlane.f32.xlu1 %v748_v38 }
 0x428   : > { %v3087_v39 = vpop.f32.mrb[12].mxu0 }
 0x429   : > { %v3089_v40 = vpop.f32.mrb[13].mxu0 }
 0x42a   : > { %v3091_v43 = vpop.f32.mrb[14].mxu0 }
 0x42b   : > { %v3093_v44 = vpop.f32.mrb[15].mxu0 }
 0x430   : > { %v3095_v45 = vpop.f32.mrb[16].mxu0 }
 0x431   : > { %v3097_v46 = vpop.f32.mrb[17].mxu0 }
 0x432   : > { %v3099_v47 = vpop.f32.mrb[18].mxu0 }
 0x433   : > { %v3101_v19 = vpop.f32.mrb[19].mxu0 }
 0x459   : > { %v750_v48 = vpop.xlane.xlu1 %749 }
 0x45a   : > { %2386 = vrcp.f32 %v750_v48 }
 0x464   : > { %v2387_v49 = vpop.eup %2386 }
 0x465   : > { %v752_v50 = vmul.f32 %v2387_v49, %v2385_v37 }
 0x467   : > { %v753_v52 = vpack.c.bf16 %v752_v50, %v752_v50 }
 0x469   : > { %2107 = vmatmul.mubr.msk.bf16.vlgmr.msra.gmra.mrb[4].mxu1 %vm741_vm2, %v753_v52 }
 0x46a   : > { %2131 = vmatpush3.bf16.msra.mxu1 %v2364_v51  ;;  %2146 = vmatprep.mubr.msk.bf16.mxu1 %vm2688_vm0, %v2687_v42 }
 0x46b   : > { %2132 = vmatprep.subr.bf16.mxu1 %v2687_v42 }
 0x46e   : > { %2133 = vmatpush3.bf16.msra.mxu1 %v2365_v53 }
 0x46f   : > { %2134 = vmatprep.subr.bf16.mxu1 %v2687_v42 }
 0x472   : > { %2135 = vmatpush3.bf16.msra.mxu1 %v2366_v54 }
 0x473   : > { %2136 = vmatprep.subr.bf16.mxu1 %v2687_v42 }
 0x476   : > { %2137 = vmatpush3.bf16.msra.mxu1 %v2367_v55 }
 0x477   : > { %2138 = vmatprep.subr.bf16.mxu1 %v2687_v42 }
 0x47a   : > { %2139 = vmatpush3.bf16.msra.mxu1 %v2368_v56 }
 0x47b   : > { %2140 = vmatprep.subr.bf16.mxu1 %v2687_v42 }
 0x47e   : > { %2141 = vmatpush3.bf16.msra.mxu1 %v2369_v57 }
 0x47f   : > { %2142 = vmatprep.subr.bf16.mxu1 %v2687_v42 }
 0x482   : > { %2143 = vmatpush3.bf16.msra.mxu1 %v2370_v58 }
 0x483   : > { %2144 = vmatprep.subr.bf16.mxu1 %v2687_v42  ;;  %v2376_v42 = vld [vmem:[#allocation11 + $0x20] sm:$0xff]  }
 0x486   : > { %2145 = vmatpush3.bf16.msra.mxu1 %v2371_v59 }
 0x487   : > { %2174 = vmatprep.subr.bf16.mxu1 %v2372_v60 }
 0x53c   : > { %v796_v61 = vpop.f32.mrb[4].mxu1 }
 0x53d   : > { %v1041_v62 = vpack.c.bf16 %v796_v61, %v796_v61  ;;  %v2108_v63 = vpop.f32.mrb[5].mxu1 }
 0x53e   : > { %v799_v1 = vpop.f32.mrb[6].mxu1 }
 0x53f   : > { %v2109_v2 = vpop.f32.mrb[7].mxu1  ;;  %2147 = vmatmul.mubr.bf16.vlgmr.msra.gmra.mrb[8].mxu1 %v1041_v62 }
 0x540   : > { %2175 = vmatpush3.bf16.msra.mxu1 %v2372_v60 }
 0x541   : > { %2176 = vmatprep.subr.bf16.mxu1 %v2373_v0 }
 0x544   : > { %2177 = vmatpush3.bf16.msra.mxu1 %v2373_v0 }
 0x545   : > { %2178 = vmatprep.subr.bf16.mxu1 %v2374_v3 }
 0x548   : > { %2179 = vmatpush3.bf16.msra.mxu1 %v2374_v3 }
 0x549   : > { %2180 = vmatprep.subr.bf16.mxu1 %v2375_v4 }
 0x54c   : > { %2181 = vmatpush3.bf16.msra.mxu1 %v2375_v4 }
 0x54d   : > { %2182 = vmatprep.subr.bf16.mxu1 %v2376_v42 }
 0x550   : > { %2183 = vmatpush3.bf16.msra.mxu1 %v2376_v42 }
 0x551   : > { %2184 = vmatprep.subr.bf16.mxu1 %v2377_v5 }
 0x554   : > { %2185 = vmatpush3.bf16.msra.mxu1 %v2377_v5 }
 0x555   : > { %2186 = vmatprep.subr.bf16.mxu1 %v2378_v6 }
 0x558   : > { %2187 = vmatpush3.bf16.msra.mxu1 %v2378_v6 }
 0x559   : > { %2188 = vmatprep.subr.bf16.mxu1 %v2379_v7 }
 0x55c   : > { %2189 = vmatpush3.bf16.msra.mxu1 %v2379_v7 }
 0x612   : > { %v1140_v8 = vpop.f32.mrb[8].mxu1 }
 0x613   : > { %v1308_v9 = vcombine.high %v1140_v8, %v1140_v8  ;;  %v1315_v10 = vrot.slane %v1140_v8, %v3060_v29  ;;  %v2148_v11 = vpop.f32.mrb[9].mxu1  ;;  %v1669_v8 = vld [vmem:[%s3205_s6 + $0x7] sm:$0x1] }
 0x614   : > { %v1143_v12 = vpop.f32.mrb[10].mxu1  ;;  %2198 = vpush %v1669_v8 }
 0x615   : > { %v1322_v13 = vrot.slane %v1308_v9, %v3060_v29  ;;  %v1323_v14 = vcombine.high %v1315_v10, %v1315_v10  ;;  %v1331_v15 = vrot.slane %v1315_v10, %v3060_v29  ;;  %v2149_v16 = vpop.f32.mrb[11].mxu1  ;;  %v2030_v9 = vld [vmem:[%s3205_s6 + $0x5] ss:$0 sm:$0xff] }
 0x617   : > { %v1324_v17 = vcombine.high %v1322_v13, %v1322_v13  ;;  %v1338_v18 = vrot.slane %v1322_v13, %v3060_v29  ;;  %v1345_v20 = vrot.slane %v1323_v14, %v3060_v29  ;;  %v1353_v21 = vcombine.high %v1331_v15, %v1331_v15 }
 0x618   : > { %v1360_v22 = vrot.slane %v1331_v15, %v3072_v41 }
 0x619   : > { %v1352_v23 = vrot.slane %v1324_v17, %v3060_v29  ;;  %v1354_v25 = vcombine.high %v1338_v18, %v1338_v18  ;;  %v1355_v26 = vcombine.high %v1345_v20, %v1345_v20  ;;  %v1364_v27 = vrot.slane %v1345_v20, %v3072_v41 }
 0x61a   : > { %v1368_v31 = vrot.slane %v1353_v21, %v3072_v41  ;;  %v1376_v32 = vrot.slane %v1338_v18, %v3072_v41  ;;  %v1397_v33 = vadd.f32 %v1360_v22, %v3089_v40  ;;  %v2031_v18 = vld [vmem:[%s3205_s6 + $0x6] ss:$0 sm:$0xff] }
 0x61b   : > { %v1356_v34 = vcombine.high %v1352_v23, %v1352_v23  ;;  %v1372_v35 = vrot.slane %v1355_v26, %v3072_v41  ;;  %v1380_v36 = vrot.slane %v1352_v23, %v3072_v41  ;;  %v1384_v29 = vrot.slane %v1354_v25, %v3072_v41 }
 0x61c   : > { %v1398_v37 = vadd.f32 %v1364_v27, %v3093_v44  ;;  %v1399_v38 = vadd.f32 %v3087_v39, %v1368_v31  ;;  %v1401_v48 = vadd.f32 %v1376_v32, %v3097_v46  ;;  %v1410_v49 = vadd.f32 %v2017_v30, %v1397_v33 }
 0x61d   : > { %v1388_v50 = vrot.slane %v1356_v34, %v3072_v41  ;;  %v1400_v51 = vadd.f32 %v3091_v43, %v1372_v35  ;;  %v1402_v40 = vadd.f32 %v1380_v36, %v3101_v19  ;;  %v1403_v52 = vadd.f32 %v3095_v45, %v1384_v29 }
 0x61e   : > { %v1412_v53 = vadd.f32 %v2017_v30, %v1399_v38  ;;  %v1411_v54 = vadd.f32 %v2017_v30, %v1398_v37  ;;  %vm1418_vm11 = vcmp.gt.f32.partialorder %v1410_v49, 0.0  ;;  %v1426_v55 = vmul.f32 0.2, %v1410_v49 }
 0x61f   : > { %v1413_v56 = vadd.f32 %v2017_v30, %v1400_v51  ;;  %v1414_v57 = vadd.f32 %v2017_v30, %v1401_v48  ;;  %v1415_v44 = vadd.f32 %v2017_v30, %v1402_v40  ;;  %v1404_v39 = vadd.f32 %v3099_v47, %v1388_v50 }
 0x620   : > { %vm1419_vm12 = vcmp.gt.f32.partialorder %v1411_v54, 0.0  ;;  %v1427_v46 = vmul.f32 0.2, %v1411_v54  ;;  %v1434_v58 = vsel %vm1418_vm11, %v1410_v49, %v1426_v55  ;;  %vm1420_vm13 = vcmp.gt.f32.partialorder %v1412_v53, 0.0 }
 0x621   : > { %vm1421_vm14 = vcmp.gt.f32.partialorder %v1413_v56, 0.0  ;;  %v1428_v41 = vmul.f32 0.2, %v1412_v53  ;;  %v1429_v43 = vmul.f32 0.2, %v1413_v56  ;;  %vm1422_vm15 = vcmp.gt.f32.partialorder %v1414_v57, 0.0 }
 0x622   : > { %v1435_v19 = vsel %vm1419_vm12, %v1411_v54, %v1427_v46  ;;  %vm1423_vm0 = vcmp.gt.f32.partialorder %v1415_v44, 0.0  ;;  %v1430_v45 = vmul.f32 0.2, %v1414_v57  ;;  %v1431_v59 = vmul.f32 0.2, %v1415_v44 }
 0x623   : > { %v2048_v60 = vpack.c.bf16 %v1435_v19, %v1434_v58  ;;  %v1436_v61 = vsel %vm1420_vm13, %v1412_v53, %v1428_v41  ;;  %v1437_v62 = vsel %vm1421_vm14, %v1413_v56, %v1429_v43  ;;  %v1416_v63 = vadd.f32 %v2017_v30, %v1403_v52 }
 0x624   : > { %v2049_v0 = vpack.c.bf16 %v1437_v62, %v1436_v61  ;;  %v1438_v1 = vsel %vm1422_vm15, %v1414_v57, %v1430_v45  ;;  %v1439_v2 = vsel %vm1423_vm0, %v1415_v44, %v1431_v59  ;;  %v1417_v47 = vadd.f32 %v2017_v30, %v1404_v39 }
 0x625   : > { %2190 = vmatprep.mubr.bf16.mxu1 %v2048_v60  ;;  %v2050_v3 = vpack.c.bf16 %v1439_v2, %v1438_v1  ;;  %vm1424_vm1 = vcmp.gt.f32.partialorder %v1416_v63, 0.0  ;;  %v1432_v4 = vmul.f32 0.2, %v1416_v63  ;;  %vm1772_vm12 = vcmask 1041409  }
 0x626   : > { %2191 = vmatmul.mubr.bf16.vlgmr.msra.gmra.mrb[12].mxu1 %v2049_v0  ;;  %vm1425_vm3 = vcmp.gt.f32.partialorder %v1417_v47, 0.0  ;;  %v1433_v42 = vmul.f32 0.2, %v1417_v47  ;;  %vm1774_vm13 = vcmask 1042434   ;;  %vm1776_vm14 = vcmask 1043459  }
 0x627   : > { %2194 = vmatprep.mubr.bf16.mxu1 %v2050_v3  ;;  %v1440_v5 = vsel %vm1424_vm1, %v1416_v63, %v1432_v4  ;;  %vm1778_vm15 = vcmask 1044484   ;;  %vm1780_vm0 = vcmask 1045509   ;;  %vm1782_vm1 = vcmask 1046534  }
 0x628   : > { %v1441_v6 = vsel %vm1425_vm3, %v1417_v47, %v1433_v42  ;;  %vm1784_vm3 = vcmask 1047559  }
 0x629   : > { %v2051_v7 = vpack.c.bf16 %v1441_v6, %v1440_v5 }
 0x62e   : > { %2195 = vmatmul.mubr.bf16.gmra.mrb[16].mxu1 %v2051_v7 }
 0x645   : > { %s2199_s22 = spop %2198 }
 0x646   : > { %v1672_v41 = vstv %s2199_s22 }
 0x6f9   : > { %v2192_v10 = vpop.f32.mrb[12].mxu1 }
 0x6fa   : > { %v1610_v11 = vadd.f32 %v2192_v10, %v2030_v9  ;;  %v1572_v12 = vpop.f32.mrb[13].mxu1 }
 0x6fb   : > { %v1608_v13 = vadd.f32 %v2030_v9, %v1572_v12  ;;  %v2193_v14 = vpop.f32.mrb[14].mxu1 }
 0x6fc   : > { %v1626_v15 = vmul.f32 0.2, %v1610_v11  ;;  %v1611_v16 = vadd.f32 %v2193_v14, %v2030_v9  ;;  %v1575_v17 = vpop.f32.mrb[15].mxu1  ;;  %vm1618_vm4 = vcmp.gt.f32.partialorder %v1610_v11, 0.0 }
 0x6fd   : > { %v1624_v20 = vmul.f32 0.2, %v1608_v13  ;;  %v1609_v21 = vadd.f32 %v2030_v9, %v1575_v17  ;;  %vm1616_vm5 = vcmp.gt.f32.partialorder %v1608_v13, 0.0 }
 0x6fe   : > { %v1627_v22 = vmul.f32 0.2, %v1611_v16  ;;  %v1634_v23 = vsel %vm1618_vm4, %v1610_v11, %v1626_v15  ;;  %vm1619_vm6 = vcmp.gt.f32.partialorder %v1611_v16, 0.0 }
 0x6ff   : > { %v1625_v25 = vmul.f32 0.2, %v1609_v21  ;;  %v1647_v26 = vmul.f32 %v2031_v18, %v1634_v23  ;;  %vm1617_vm7 = vcmp.gt.f32.partialorder %v1609_v21, 0.0  ;;  %v1632_v30 = vsel %vm1616_vm5, %v1608_v13, %v1624_v20 }
 0x700   : > { %v1635_v27 = vsel %vm1619_vm6, %v1611_v16, %v1627_v22  ;;  %v1645_v37 = vmul.f32 %v2031_v18, %v1632_v30  ;;  %v1739_v30 = vand.u32 127, %v911_v24 }
 0x701   : > { %1657 = vadd.xlane.f32.xlu0 %v1647_v26  ;;  %v2196_v31 = vpop.f32.mrb[16].mxu1  ;;  %v1648_v32 = vmul.f32 %v2031_v18, %v1635_v27  ;;  %v1633_v33 = vsel %vm1617_vm7, %v1609_v21, %v1625_v25 }
 0x702   : > { %v1614_v34 = vadd.f32 %v2196_v31, %v2030_v9  ;;  %v1588_v35 = vpop.f32.mrb[17].mxu1  ;;  %v1646_v49 = vmul.f32 %v2031_v18, %v1633_v33 }
 0x703   : > { %v1612_v36 = vadd.f32 %v2030_v9, %v1588_v35  ;;  %1659 = vadd.xlane.f32.xlu1 %v1648_v32  ;;  %v2197_v29 = vpop.f32.mrb[18].mxu1 }
 0x704   : > { %v1615_v38 = vadd.f32 %v2197_v29, %v2030_v9  ;;  %v1591_v48 = vpop.f32.mrb[19].mxu1  ;;  %v1630_v50 = vmul.f32 0.2, %v1614_v34  ;;  %vm1622_vm9 = vcmp.gt.f32.partialorder %v1614_v34, 0.0 }
 0x705   : > { %v1628_v51 = vmul.f32 0.2, %v1612_v36  ;;  %v1613_v40 = vadd.f32 %v2030_v9, %v1591_v48  ;;  %1653 = vadd.xlane.f32.xlu0 %v1645_v37  ;;  %vm1620_vm8 = vcmp.gt.f32.partialorder %v1612_v36, 0.0 }
 0x706   : > { %v1631_v52 = vmul.f32 0.2, %v1615_v38  ;;  %vm1623_vm11 = vcmp.gt.f32.partialorder %v1615_v38, 0.0  ;;  %v1638_v57 = vsel %vm1622_vm9, %v1614_v34, %v1630_v50 }
 0x707   : > { %v1629_v53 = vmul.f32 0.2, %v1613_v40  ;;  %1655 = vadd.xlane.f32.xlu1 %v1646_v49  ;;  %v1636_v54 = vsel %vm1620_vm8, %v1612_v36, %v1628_v51  ;;  %vm1621_vm10 = vcmp.gt.f32.partialorder %v1613_v40, 0.0  ;;  %v1651_v46 = vmul.f32 %v2031_v18, %v1638_v57 }
 0x708   : > { %v1649_v55 = vmul.f32 %v2031_v18, %v1636_v54  ;;  %v1639_v39 = vsel %vm1623_vm11, %v1615_v38, %v1631_v52  ;;  %v1742_v36 = vsub.s32 %v1739_v30, %v3057_v28 }
 0x709   : > { %v1637_v56 = vsel %vm1621_vm10, %v1613_v40, %v1629_v53  ;;  %v1652_v58 = vmul.f32 %v2031_v18, %v1639_v39 }
 0x70a   : > { %1661 = vadd.xlane.f32.xlu0 %v1649_v55  ;;  %v1650_v44 = vmul.f32 %v2031_v18, %v1637_v56 }
 0x70c   : > { %1663 = vadd.xlane.f32.xlu1 %v1650_v44 }
 0x70e   : > { %1665 = vadd.xlane.f32.xlu0 %v1651_v46 }
 0x710   : > { %1667 = vadd.xlane.f32.xlu1 %v1652_v58 }
 0x78e   : > { %v1658_v43 = vpop.xlane.xlu0 %1657 }
 0x78f   : > { %v1676_v19 = vadd.f32 %v1672_v41, %v1658_v43 }
 0x790   : > { %v1660_v45 = vpop.xlane.xlu1 %1659 }
 0x791   : > { %v2034_v59 = vmul.f32 -1.442695, %v1676_v19  ;;  %v1677_v60 = vadd.f32 %v1672_v41, %v1660_v45 }
 0x792   : > { %v1654_v61 = vpop.xlane.xlu0 %1653 }
 0x793   : > { %2388 = vpow2.f32 %v2034_v59  ;;  %v2035_v62 = vmul.f32 -1.442695, %v1677_v60  ;;  %v1674_v63 = vadd.f32 %v1672_v41, %v1654_v61 }
 0x794   : > { %v1656_v0 = vpop.xlane.xlu1 %1655 }
 0x795   : > { %2390 = vpow2.f32 %v2035_v62  ;;  %v2032_v1 = vmul.f32 -1.442695, %v1674_v63  ;;  %v1675_v2 = vadd.f32 %v1672_v41, %v1656_v0 }
 0x797   : > { %2392 = vpow2.f32 %v2032_v1  ;;  %v2033_v47 = vmul.f32 -1.442695, %v1675_v2  ;;  %v1662_v3 = vpop.xlane.xlu0 %1661 }
 0x798   : > { %v1678_v4 = vadd.f32 %v1672_v41, %v1662_v3 }
 0x799   : > { %2394 = vpow2.f32 %v2033_v47  ;;  %v1664_v42 = vpop.xlane.xlu1 %1663 }
 0x79a   : > { %v2036_v5 = vmul.f32 -1.442695, %v1678_v4  ;;  %v1679_v6 = vadd.f32 %v1672_v41, %v1664_v42 }
 0x79b   : > { %v1666_v7 = vpop.xlane.xlu0 %1665 }
 0x79c   : > { %2396 = vpow2.f32 %v2036_v5  ;;  %v2037_v8 = vmul.f32 -1.442695, %v1679_v6  ;;  %v1680_v9 = vadd.f32 %v1672_v41, %v1666_v7 }
 0x79d   : > { %v2389_v10 = vpop.eup %2388  ;;  %v1668_v11 = vpop.xlane.xlu1 %1667 }
 0x79e   : > { %v1708_v12 = vadd.f32 1.0, %v2389_v10  ;;  %2398 = vpow2.f32 %v2037_v8  ;;  %v2038_v13 = vmul.f32 -1.442695, %v1680_v9  ;;  %v1681_v14 = vadd.f32 %v1672_v41, %v1668_v11 }
 0x79f   : > { %v2391_v15 = vpop.eup %2390 }
 0x7a0   : > { %v2039_v16 = vmul.f32 -1.442695, %v1681_v14  ;;  %v1709_v18 = vadd.f32 1.0, %v2391_v15  ;;  %2400 = vpow2.f32 %v2038_v13 }
 0x7a1   : > { %v2393_v17 = vpop.eup %2392  ;;  %2402 = vrcp.f32 %v1708_v12 }
 0x7a2   : > { %v1706_v20 = vadd.f32 1.0, %v2393_v17  ;;  %2404 = vpow2.f32 %v2039_v16 }
 0x7a3   : > { %v2395_v21 = vpop.eup %2394 }
 0x7a4   : > { %2406 = vrcp.f32 %v1706_v20  ;;  %v1707_v22 = vadd.f32 1.0, %v2395_v21 }
 0x7a5   : > { %2408 = vrcp.f32 %v1709_v18 }
 0x7a6   : > { %v2397_v23 = vpop.eup %2396  ;;  %2410 = vrcp.f32 %v1707_v22 }
 0x7a7   : > { %v1710_v25 = vadd.f32 1.0, %v2397_v23 }
 0x7a8   : > { %v2399_v26 = vpop.eup %2398 }
 0x7a9   : > { %2412 = vrcp.f32 %v1710_v25  ;;  %v1711_v27 = vadd.f32 1.0, %v2399_v26 }
 0x7aa   : > { %v2401_v31 = vpop.eup %2400 }
 0x7ab   : > { %2414 = vrcp.f32 %v1711_v27  ;;  %v2403_v32 = vpop.eup %2402  ;;  %v1712_v33 = vadd.f32 1.0, %v2401_v31 }
 0x7ac   : > { %v2405_v34 = vpop.eup %2404  ;;  %v1751_v50 = vrot.slane %v2403_v32, %v1742_v36 }
 0x7ad   : > { %2416 = vrcp.f32 %v1712_v33  ;;  %v1713_v29 = vadd.f32 1.0, %v2405_v34 }
 0x7ae   : > { %v2407_v35 = vpop.eup %2406 }
 0x7af   : > { %v2409_v37 = vpop.eup %2408  ;;  %2418 = vrcp.f32 %v1713_v29  ;;  %v1743_v48 = vrot.slane %v2407_v35, %v1742_v36 }
 0x7b0   : > { %v2411_v38 = vpop.eup %2410  ;;  %v1755_v51 = vrot.slane %v2409_v37, %v1742_v36 }
 0x7b1   : > { %v1747_v49 = vrot.slane %v2411_v38, %v1742_v36 }
 0x7b3   : > { %v2413_v24 = vpop.eup %2412  ;;  %v1773_v40 = vsel %vm1772_vm12, %v1747_v49, %v1743_v48 }
 0x7b4   : > { %v1759_v52 = vrot.slane %v2413_v24, %v1742_v36  ;;  %v1775_v53 = vsel %vm1774_vm13, %v1751_v50, %v1773_v40 }
 0x7b5   : > { %v2415_v28 = vpop.eup %2414  ;;  %v1777_v54 = vsel %vm1776_vm14, %v1755_v51, %v1775_v53 }
 0x7b6   : > { %v1763_v55 = vrot.slane %v2415_v28, %v1742_v36  ;;  %v1779_v56 = vsel %vm1778_vm15, %v1759_v52, %v1777_v54 }
 0x7b7   : > { %v2417_v57 = vpop.eup %2416 }
 0x7b8   : > { %v1781_v44 = vsel %vm1780_vm0, %v1763_v55, %v1779_v56  ;;  %v1767_v39 = vrot.slane %v2417_v57, %v1742_v36 }
 0x7b9   : > { %v2419_v46 = vpop.eup %2418 }
 0x7ba   : > { %v1771_v58 = vrot.slane %v2419_v46, %v1742_v36  ;;  %v1783_v41 = vsel %vm1782_vm1, %v1767_v39, %v1781_v44 }
 0x7bc   : > { %v1785_v43 = vsel %vm1784_vm3, %v1771_v58, %v1783_v41 }
 0x7bd   : > { %1787 = vst.msk [vmem:[%s388_s14] sm:$0xff] %vm741_vm2, %v1785_v43 }
 0x7be   : > { %2605 = shalt.err (!%p2602_p6)
}
 0x7bf   : > { %s2606_s20 = scalar_lea.hbm %s3154_s5, 128  ;;  %s2610_s29 = scalar_lea.hbm %s3206_s7, 256 }
 0x7c0   : > { %p2607_p4 = scmp.ne.s32.totalorder %s3154_s5, %s2606_s20  ;;  %p2611_p10 = scmp.lt.u32.totalorder %s3154_s5, %s3206_s7 }
 0x7c1   : > { %p2612_p1 = scmp.lt.u32.totalorder %s2610_s29, %s2606_s20  ;;  %p2614_p12 = scmp.lt.u32.totalorder %s2606_s20, %s3154_s5 }
 0x7c2   : > { %p2608_p8 = pnand %p2607_p4, %p3236_p13 }
 0x7c3   : > { %p2613_p11 = por %p2612_p1, %p2611_p10 }
 0x7c4   : > { %p2609_p5 = pneg %p2608_p8 }
 0x7c5   : > { %p2615_p7 = por %p2614_p12, %p2613_p11 }
 0x7c7   : > { %p2616_p9 = pnand %p2615_p7, %p2609_p5 }
 0x7c9   : > { %2619 = shalt.err (!%p2616_p9)
}
 0x7ca   : > { %2220 = dma.vmem_to_hbm [thread:$0]  (%p3236_p13), %s3156_s23, 128, %s3154_s5, %s1789_s30  }
 0x7cb PF: > { %s1814_s18 = sand.u32 1, %s2662_s24   ;;  %p3237_p0 = scmp.ne.s32.totalorder %s3226_s15, 0 }
 0x7cc   : > { %p3238_p2 = scmp.ge.s32.totalorder %s2674_s27, 2  ;;  %s1815_s22 = scalar_lea.sflag [#allocation4], %s1814_s18 }
 0x7ce   : > { %p2243_p3 = pnand %p3238_p2, %p3237_p0 }
 0x7d0   : > { %2657 = dma.done.wait (!%p2243_p3), %s1815_s22, 128  }
 0x7d1   : > { %2659 = vsyncadd (!%p2243_p3), %s1815_s22, 4294967168  ;;  %p25_p6 = scmp.ge.s32.totalorder %s2876_s19, 4   ;;  %s3239_s24 = smov %s2666_s25 }
 0x7d2   : > { %s3240_s25 = smov %s2670_s26  ;;  %s3241_s26 = smov %s2887_s12 }
 0x7d3   : > { %s3242_s27 = smov %s2876_s19  ;;  %27 = sbr.rel (!%p25_p6) target bundleno = 14 (0xe), region = 122 }
 0x7da   :  { %1820 = vsyncpa [#allocation3], 1 }
 0x7db   :  { %1822 = vsyncpa [#allocation3 + $0x1], 1 }
 0x7dc   :  { %1823 = vsyncpa [#allocation6], 1 }
 0x7dd   :  { %1825 = vsyncpa [#allocation6 + $0x1], 1 }
 0x7de   :  { %1826 = vsyncpa [#allocation9], 1 }
 0x7df   :  { %1827 = vsyncpa [#allocation12], 1 }
 0x7e0   :  { %1828 = vsyncpa [#allocation4], 1 }
 0x7e1   :  { %1830 = vsyncpa [#allocation4 + $0x1], 1 }

</bundles_post_ra>
